<compile_context>
chip_gen: v7x
topology: tpu7x:2x2x1
jax: 0.10.0
libtpu: 0.0.40
codegen_flags: <defaults>
</compile_context>

<pallas_src>
import jax
import jax.numpy as jnp
from jax.experimental import pallas as pl
from jax.experimental.pallas import tpu as pltpu


# ----------------------------------------------------------------------------
# Pallas kernels
# ----------------------------------------------------------------------------
def _conv_relu_pool_kernel(x_ref, w_ref, b_ref, o_ref):
    """Fused conv (as matmul) + bias + ReLU + 2x2 max-pool for one batch element.

    x_ref: (1, P, K, M) bf16  im2col patches, grouped by pool phase (P=4)
    w_ref: (Cout, K)    bf16  conv weight, K ordered (cin, kh, kw)
    b_ref: (Cout, 1)    f32   bias (broadcast over lanes)
    o_ref: (1, Cout, M) f32   pooled output, spatial (M) lane-dense
    """
    w = w_ref[...]
    n_phase = x_ref.shape[1]
    acc = jnp.dot(w, x_ref[0, 0], preferred_element_type=jnp.float32)
    for p in range(1, n_phase):
        acc = jnp.maximum(
            acc, jnp.dot(w, x_ref[0, p], preferred_element_type=jnp.float32))
    # max over pool phases commutes with (+bias) and ReLU.
    o_ref[0] = jnp.maximum(acc + b_ref[...], 0.0).astype(o_ref.dtype)


def _head_kernel(x_ref, w1_ref, b1_ref, w2_ref, b2_ref, logits_ref, probs_ref):
    """Fused fc1 -> fc2 -> softmax (no ReLU between, matching the module)."""
    x = x_ref[...].astype(jnp.bfloat16)
    h = jnp.dot(x, w1_ref[...], preferred_element_type=jnp.float32) + b1_ref[...]
    # dropout layers are identity at inference.
    logits = jnp.dot(h, w2_ref[...], preferred_element_type=jnp.float32) + b2_ref[...]
    logits_ref[...] = logits.astype(logits_ref.dtype)
    m = jnp.max(logits, axis=-1, keepdims=True)
    e = jnp.exp(logits - m)
    probs_ref[...] = (e / jnp.sum(e, axis=-1, keepdims=True)).astype(probs_ref.dtype)


# ----------------------------------------------------------------------------
# Pallas wrappers
# ----------------------------------------------------------------------------
def conv_relu_pool_pallas(patches, w, b):
    """patches: (B, P, K, M) bf16; w: (Cout, K) bf16; b: (Cout, 1) f32.
    Returns pooled activation (B, Cout, M) f32, M = pooled H*W (lane-dense)."""
    B, P, K, M = patches.shape
    Cout = w.shape[0]
    return pl.pallas_call(
        _conv_relu_pool_kernel,
        out_shape=jax.ShapeDtypeStruct((B, Cout, M), jnp.float32),
        grid=(B,),
        in_specs=[
            pl.BlockSpec((1, P, K, M), lambda i: (i, 0, 0, 0)),
            pl.BlockSpec((Cout, K), lambda i: (0, 0)),
            pl.BlockSpec((Cout, 1), lambda i: (0, 0)),
        ],
        out_specs=pl.BlockSpec((1, Cout, M), lambda i: (i, 0, 0)),
        compiler_params=pltpu.CompilerParams(dimension_semantics=("parallel",)),
    )(patches, w, b)


def head_pallas(x, w1, b1, w2, b2):
    """x: (B, 2048) f32; w1: (2048, 128) bf16; w2: (128, 35) f32. One grid step
    (head is ~0.5 MFLOP; the conv kernels carry the v7x 2-core parallelism)."""
    B, K = x.shape
    H = w1.shape[1]
    N = w2.shape[1]
    spec_out = pl.BlockSpec((B, N), lambda i: (0, 0))
    return pl.pallas_call(
        _head_kernel,
        out_shape=(jax.ShapeDtypeStruct((B, N), jnp.float32),
                   jax.ShapeDtypeStruct((B, N), jnp.float32)),
        grid=(1,),
        in_specs=[
            pl.BlockSpec((B, K), lambda i: (0, 0)),
            pl.BlockSpec((K, H), lambda i: (0, 0)),
            pl.BlockSpec((1, H), lambda i: (0, 0)),
            pl.BlockSpec((H, N), lambda i: (0, 0)),
            pl.BlockSpec((1, N), lambda i: (0, 0)),
        ],
        out_specs=(spec_out, spec_out),
    )(x, w1, b1, w2, b2)


# ----------------------------------------------------------------------------
# Patch extraction (layout glue, plain JAX): pool-phase-grouped im2col.
# Conv stride 2 + pool stride 2  =>  each (pool phase a,b; tap kh,kw) is a
# stride-4 slice of the padded input. K is ordered (cin, kh, kw) to match
# torch's weight.reshape(Cout, -1); columns are ordered (Po, Qo) row-major.
# ----------------------------------------------------------------------------
def _pool_conv_patches(x_nchw, *, k=3, stride=2, pad=2, pool=2):
    B, C, H, W = x_nchw.shape
    Ho = (H + 2 * pad - k) // stride + 1
    Wo = (W + 2 * pad - k) // stride + 1
    Po, Qo = Ho // pool, Wo // pool
    step = stride * pool
    xp = jnp.pad(x_nchw, ((0, 0), (0, 0), (pad, pad), (pad, pad)))
    taps = []
    for a in range(pool):
        for b in range(pool):
            for kh in range(k):
                for kw in range(k):
                    oh = stride * a + kh
                    ow = stride * b + kw
                    taps.append(xp[:, :, oh:oh + step * Po:step, ow:ow + step * Qo:step])
    t = jnp.stack(taps, axis=0).reshape(pool * pool, k * k, B, C, Po, Qo)
    t = jnp.transpose(t, (2, 0, 3, 1, 4, 5))          # (B, phase, C, k*k, Po, Qo)
    t = t.reshape(B, pool * pool, C * k * k, Po * Qo)
    return t.astype(jnp.bfloat16), Po, Qo


# ----------------------------------------------------------------------------
# Parameters
# ----------------------------------------------------------------------------
def init_params(key):
    """Raw parameters in torch layout."""
    ks = jax.random.split(key, 8)
    return {
        "w_conv1": jax.random.normal(ks[0], (16, 3, 3, 3), jnp.float32) * 0.1,
        "b_conv1": jax.random.normal(ks[1], (16,), jnp.float32) * 0.01,
        "w_conv2": jax.random.normal(ks[2], (32, 16, 3, 3), jnp.float32) * 0.05,
        "b_conv2": jax.random.normal(ks[3], (32,), jnp.float32) * 0.01,
        "w_fc1": jax.random.normal(ks[4], (128, 2048), jnp.float32) * 0.02,  # torch (out, in)
        "b_fc1": jax.random.normal(ks[5], (128,), jnp.float32) * 0.01,
        "w_fc2": jax.random.normal(ks[6], (35, 128), jnp.float32) * 0.05,    # torch (out, in)
        "b_fc2": jax.random.normal(ks[7], (35,), jnp.float32) * 0.01,
    }


def prepare_params(raw):
    """One-time reshape / transpose / cast so no weight massaging happens per forward."""
    return {
        "w_conv1": raw["w_conv1"].reshape(raw["w_conv1"].shape[0], -1).astype(jnp.bfloat16),
        "b_conv1": raw["b_conv1"].reshape(-1, 1).astype(jnp.float32),
        "w_conv2": raw["w_conv2"].reshape(raw["w_conv2"].shape[0], -1).astype(jnp.bfloat16),
        "b_conv2": raw["b_conv2"].reshape(-1, 1).astype(jnp.float32),
        "w_fc1": raw["w_fc1"].T.astype(jnp.bfloat16),        # (2048, 128)
        "b_fc1": raw["b_fc1"].reshape(1, -1).astype(jnp.float32),
        "w_fc2": raw["w_fc2"].T.astype(jnp.float32),         # (128, 35) — keep logits path f32
        "b_fc2": raw["b_fc2"].reshape(1, -1).astype(jnp.float32),
    }


# ----------------------------------------------------------------------------
# Full CNN forward
# ----------------------------------------------------------------------------
def cnn_forward(x, params):
    B = x.shape[0]

    # conv1 (3 -> 16, k=3, s=2, p=2) + ReLU + 2x2 maxpool, fused in one kernel.
    p1, P1, Q1 = _pool_conv_patches(x)                                   # (B, 4, 27, 1024)
    h1 = conv_relu_pool_pallas(p1, params["w_conv1"], params["b_conv1"])  # (B, 16, 1024)
    h1 = h1.reshape(B, 16, P1, Q1)                                        # NCHW (B,16,32,32)

    # conv2 (16 -> 32, k=3, s=2, p=2) + ReLU + 2x2 maxpool, fused in one kernel.
    p2, P2, Q2 = _pool_conv_patches(h1)                                   # (B, 4, 144, 64)
    h2 = conv_relu_pool_pallas(p2, params["w_conv2"], params["b_conv2"])  # (B, 32, 64)

    # (B, Cout, Po*Qo) already matches torch's NCHW `b.view(-1, 2048)` ordering.
    c = h2.reshape(B, 32 * P2 * Q2)

    # TODO(synk): training-mode dropout (p=0.5) not implemented; inference semantics only.
    logits, probs = head_pallas(c, params["w_fc1"], params["b_fc1"],
                                params["w_fc2"], params["b_fc2"])
    return logits, probs


if __name__ == "__main__":
    key = jax.random.PRNGKey(0)
    k_params, k_x = jax.random.split(key)
    params = prepare_params(init_params(k_params))

    # The module's flatten (view(-1, 2048)) implies 3x128x128 inputs; batch=2 keeps it small.
    x = jax.random.normal(k_x, (2, 3, 128, 128), jnp.float32)

    logits, probs = jax.jit(cnn_forward)(x, params)
    logits = jax.block_until_ready(logits)
    probs = jax.block_until_ready(probs)

    assert logits.shape == (2, 35) and probs.shape == (2, 35)
    assert bool(jnp.all(jnp.abs(jnp.sum(probs, axis=1) - 1.0) < 1e-5))
    assert bool(jnp.all(jnp.isfinite(logits))) and bool(jnp.all(jnp.isfinite(probs)))
    print("KERNEL_OK")
</pallas_src>

<mosaic_0001>
module attributes {stable_mosaic.version = 11 : i64} {
  func.func @_conv_relu_pool_kernel(%arg0: i32, %arg1: memref<1x4x27x1024xbf16, #tpu.memory_space<vmem>>, %arg2: memref<16x27xbf16, #tpu.memory_space<vmem>>, %arg3: memref<16x1xf32, #tpu.memory_space<vmem>>, %arg4: memref<1x16x1024xf32, #tpu.memory_space<vmem>>) attributes {dimension_semantics = [#tpu.dimension_semantics<parallel>], iteration_bounds = array<i64: 2>, scalar_prefetch = 0 : i64, scratch_operands = 0 : i64, tpu.core_type = #tpu.core_type<tc>, window_params = [{transform_indices = @transform_0, window_bounds = array<i64: 1, 4, 27, 1024>}, {pipeline_mode = #tpu.pipeline_mode<synchronous>, transform_indices = @transform_1, window_bounds = array<i64: 16, 27>}, {pipeline_mode = #tpu.pipeline_mode<synchronous>, transform_indices = @transform_2, window_bounds = array<i64: 16, 1>}, {transform_indices = @transform_3, window_bounds = array<i64: 1, 16, 1024>}]} {
    %c0 = arith.constant 0 : index
    %c0_0 = arith.constant 0 : index
    %0 = vector.load %arg2[%c0, %c0_0] : memref<16x27xbf16, #tpu.memory_space<vmem>>, vector<16x27xbf16>
    %c0_1 = arith.constant 0 : index
    %c0_2 = arith.constant 0 : index
    %c0_3 = arith.constant 0 : index
    %c0_4 = arith.constant 0 : index
    %1 = vector.load %arg1[%c0_1, %c0_2, %c0_3, %c0_4] : memref<1x4x27x1024xbf16, #tpu.memory_space<vmem>>, vector<1x1x27x1024xbf16>
    %2 = vector.shape_cast %1 : vector<1x1x27x1024xbf16> to vector<27x1024xbf16>
    %cst = arith.constant dense<0.000000e+00> : vector<16x1024xf32>
    %3 = tpu.matmul %0, %2, %cst {dimension_numbers = #tpu.dot_dimension_numbers<[1], [0], [0], [1], [0, 0, 1, 1], [], []>} : vector<16x27xbf16>, vector<27x1024xbf16>, vector<16x1024xf32> -> vector<16x1024xf32>
    %c0_5 = arith.constant 0 : index
    %c1 = arith.constant 1 : index
    %c0_6 = arith.constant 0 : index
    %c0_7 = arith.constant 0 : index
    %4 = vector.load %arg1[%c0_5, %c1, %c0_6, %c0_7] : memref<1x4x27x1024xbf16, #tpu.memory_space<vmem>>, vector<1x1x27x1024xbf16>
    %5 = vector.shape_cast %4 : vector<1x1x27x1024xbf16> to vector<27x1024xbf16>
    %cst_8 = arith.constant dense<0.000000e+00> : vector<16x1024xf32>
    %6 = tpu.matmul %0, %5, %cst_8 {dimension_numbers = #tpu.dot_dimension_numbers<[1], [0], [0], [1], [0, 0, 1, 1], [], []>} : vector<16x27xbf16>, vector<27x1024xbf16>, vector<16x1024xf32> -> vector<16x1024xf32>
    %7 = arith.maximumf %3, %6 : vector<16x1024xf32>
    %c0_9 = arith.constant 0 : index
    %c2 = arith.constant 2 : index
    %c0_10 = arith.constant 0 : index
    %c0_11 = arith.constant 0 : index
    %8 = vector.load %arg1[%c0_9, %c2, %c0_10, %c0_11] : memref<1x4x27x1024xbf16, #tpu.memory_space<vmem>>, vector<1x1x27x1024xbf16>
    %9 = vector.shape_cast %8 : vector<1x1x27x1024xbf16> to vector<27x1024xbf16>
    %cst_12 = arith.constant dense<0.000000e+00> : vector<16x1024xf32>
    %10 = tpu.matmul %0, %9, %cst_12 {dimension_numbers = #tpu.dot_dimension_numbers<[1], [0], [0], [1], [0, 0, 1, 1], [], []>} : vector<16x27xbf16>, vector<27x1024xbf16>, vector<16x1024xf32> -> vector<16x1024xf32>
    %11 = arith.maximumf %7, %10 : vector<16x1024xf32>
    %c0_13 = arith.constant 0 : index
    %c3 = arith.constant 3 : index
    %c0_14 = arith.constant 0 : index
    %c0_15 = arith.constant 0 : index
    %12 = vector.load %arg1[%c0_13, %c3, %c0_14, %c0_15] : memref<1x4x27x1024xbf16, #tpu.memory_space<vmem>>, vector<1x1x27x1024xbf16>
    %13 = vector.shape_cast %12 : vector<1x1x27x1024xbf16> to vector<27x1024xbf16>
    %cst_16 = arith.constant dense<0.000000e+00> : vector<16x1024xf32>
    %14 = tpu.matmul %0, %13, %cst_16 {dimension_numbers = #tpu.dot_dimension_numbers<[1], [0], [0], [1], [0, 0, 1, 1], [], []>} : vector<16x27xbf16>, vector<27x1024xbf16>, vector<16x1024xf32> -> vector<16x1024xf32>
    %15 = arith.maximumf %11, %14 : vector<16x1024xf32>
    %c0_17 = arith.constant 0 : index
    %c0_18 = arith.constant 0 : index
    %16 = vector.load %arg3[%c0_17, %c0_18] : memref<16x1xf32, #tpu.memory_space<vmem>>, vector<16x1xf32>
    %17 = vector.broadcast %16 : vector<16x1xf32> to vector<16x1024xf32>
    %18 = arith.addf %15, %17 : vector<16x1024xf32>
    %cst_19 = arith.constant 0.000000e+00 : f32
    %19 = vector.broadcast %cst_19 : f32 to vector<16x1024xf32>
    %20 = arith.maximumf %18, %19 : vector<16x1024xf32>
    %c0_20 = arith.constant 0 : index
    %c0_21 = arith.constant 0 : index
    %c0_22 = arith.constant 0 : index
    %21 = vector.load %arg4[%c0_20, %c0_21, %c0_22] : memref<1x16x1024xf32, #tpu.memory_space<vmem>>, vector<1x16x1024xf32>
    %22 = vector.shape_cast %21 : vector<1x16x1024xf32> to vector<16x1024xf32>
    %23 = vector.shape_cast %20 : vector<16x1024xf32> to vector<1x16x1024xf32>
    tpu.vector_store %arg4[%c0_20, %c0_21, %c0_22], %23 {strides = array<i32>} : memref<1x16x1024xf32, #tpu.memory_space<vmem>>, vector<1x16x1024xf32>,
    return
  }
  func.func @transform_0(%arg0: i32) -> (i32, i32, i32, i32) {
    %c0_i32 = arith.constant 0 : i32
    %c0_i32_0 = arith.constant 0 : i32
    %c0_i32_1 = arith.constant 0 : i32
    %c0_i32_2 = arith.constant 0 : i32
    return %arg0, %c0_i32, %c0_i32_0, %c0_i32_1 : i32, i32, i32, i32
  }
  func.func @transform_1(%arg0: i32) -> (i32, i32) {
    %c0_i32 = arith.constant 0 : i32
    %c0_i32_0 = arith.constant 0 : i32
    %c0_i32_1 = arith.constant 0 : i32
    return %c0_i32, %c0_i32_0 : i32, i32
  }
  func.func @transform_2(%arg0: i32) -> (i32, i32) {
    %c0_i32 = arith.constant 0 : i32
    %c0_i32_0 = arith.constant 0 : i32
    %c0_i32_1 = arith.constant 0 : i32
    return %c0_i32, %c0_i32_0 : i32, i32
  }
  func.func @transform_3(%arg0: i32) -> (i32, i32, i32) {
    %c0_i32 = arith.constant 0 : i32
    %c0_i32_0 = arith.constant 0 : i32
    %c0_i32_1 = arith.constant 0 : i32
    return %arg0, %c0_i32, %c0_i32_0 : i32, i32, i32
  }
}

module attributes {stable_mosaic.version = 11 : i64} {
  func.func @_conv_relu_pool_kernel(%arg0: i32, %arg1: memref<1x4x144x64xbf16, #tpu.memory_space<vmem>>, %arg2: memref<32x144xbf16, #tpu.memory_space<vmem>>, %arg3: memref<32x1xf32, #tpu.memory_space<vmem>>, %arg4: memref<1x32x64xf32, #tpu.memory_space<vmem>>) attributes {dimension_semantics = [#tpu.dimension_semantics<parallel>], iteration_bounds = array<i64: 2>, scalar_prefetch = 0 : i64, scratch_operands = 0 : i64, tpu.core_type = #tpu.core_type<tc>, window_params = [{transform_indices = @transform_0, window_bounds = array<i64: 1, 4, 144, 64>}, {pipeline_mode = #tpu.pipeline_mode<synchronous>, transform_indices = @transform_1, window_bounds = array<i64: 32, 144>}, {pipeline_mode = #tpu.pipeline_mode<synchronous>, transform_indices = @transform_2, window_bounds = array<i64: 32, 1>}, {transform_indices = @transform_3, window_bounds = array<i64: 1, 32, 64>}]} {
    %c0 = arith.constant 0 : index
    %c0_0 = arith.constant 0 : index
    %0 = vector.load %arg2[%c0, %c0_0] : memref<32x144xbf16, #tpu.memory_space<vmem>>, vector<32x144xbf16>
    %c0_1 = arith.constant 0 : index
    %c0_2 = arith.constant 0 : index
    %c0_3 = arith.constant 0 : index
    %c0_4 = arith.constant 0 : index
    %1 = vector.load %arg1[%c0_1, %c0_2, %c0_3, %c0_4] : memref<1x4x144x64xbf16, #tpu.memory_space<vmem>>, vector<1x1x144x64xbf16>
    %2 = vector.shape_cast %1 : vector<1x1x144x64xbf16> to vector<144x64xbf16>
    %cst = arith.constant dense<0.000000e+00> : vector<32x64xf32>
    %3 = tpu.matmul %0, %2, %cst {dimension_numbers = #tpu.dot_dimension_numbers<[1], [0], [0], [1], [0, 0, 1, 1], [], []>} : vector<32x144xbf16>, vector<144x64xbf16>, vector<32x64xf32> -> vector<32x64xf32>
    %c0_5 = arith.constant 0 : index
    %c1 = arith.constant 1 : index
    %c0_6 = arith.constant 0 : index
    %c0_7 = arith.constant 0 : index
    %4 = vector.load %arg1[%c0_5, %c1, %c0_6, %c0_7] : memref<1x4x144x64xbf16, #tpu.memory_space<vmem>>, vector<1x1x144x64xbf16>
    %5 = vector.shape_cast %4 : vector<1x1x144x64xbf16> to vector<144x64xbf16>
    %cst_8 = arith.constant dense<0.000000e+00> : vector<32x64xf32>
    %6 = tpu.matmul %0, %5, %cst_8 {dimension_numbers = #tpu.dot_dimension_numbers<[1], [0], [0], [1], [0, 0, 1, 1], [], []>} : vector<32x144xbf16>, vector<144x64xbf16>, vector<32x64xf32> -> vector<32x64xf32>
    %7 = arith.maximumf %3, %6 : vector<32x64xf32>
    %c0_9 = arith.constant 0 : index
    %c2 = arith.constant 2 : index
    %c0_10 = arith.constant 0 : index
    %c0_11 = arith.constant 0 : index
    %8 = vector.load %arg1[%c0_9, %c2, %c0_10, %c0_11] : memref<1x4x144x64xbf16, #tpu.memory_space<vmem>>, vector<1x1x144x64xbf16>
    %9 = vector.shape_cast %8 : vector<1x1x144x64xbf16> to vector<144x64xbf16>
    %cst_12 = arith.constant dense<0.000000e+00> : vector<32x64xf32>
    %10 = tpu.matmul %0, %9, %cst_12 {dimension_numbers = #tpu.dot_dimension_numbers<[1], [0], [0], [1], [0, 0, 1, 1], [], []>} : vector<32x144xbf16>, vector<144x64xbf16>, vector<32x64xf32> -> vector<32x64xf32>
    %11 = arith.maximumf %7, %10 : vector<32x64xf32>
    %c0_13 = arith.constant 0 : index
    %c3 = arith.constant 3 : index
    %c0_14 = arith.constant 0 : index
    %c0_15 = arith.constant 0 : index
    %12 = vector.load %arg1[%c0_13, %c3, %c0_14, %c0_15] : memref<1x4x144x64xbf16, #tpu.memory_space<vmem>>, vector<1x1x144x64xbf16>
    %13 = vector.shape_cast %12 : vector<1x1x144x64xbf16> to vector<144x64xbf16>
    %cst_16 = arith.constant dense<0.000000e+00> : vector<32x64xf32>
    %14 = tpu.matmul %0, %13, %cst_16 {dimension_numbers = #tpu.dot_dimension_numbers<[1], [0], [0], [1], [0, 0, 1, 1], [], []>} : vector<32x144xbf16>, vector<144x64xbf16>, vector<32x64xf32> -> vector<32x64xf32>
    %15 = arith.maximumf %11, %14 : vector<32x64xf32>
    %c0_17 = arith.constant 0 : index
    %c0_18 = arith.constant 0 : index
    %16 = vector.load %arg3[%c0_17, %c0_18] : memref<32x1xf32, #tpu.memory_space<vmem>>, vector<32x1xf32>
    %17 = vector.broadcast %16 : vector<32x1xf32> to vector<32x64xf32>
    %18 = arith.addf %15, %17 : vector<32x64xf32>
    %cst_19 = arith.constant 0.000000e+00 : f32
    %19 = vector.broadcast %cst_19 : f32 to vector<32x64xf32>
    %20 = arith.maximumf %18, %19 : vector<32x64xf32>
    %c0_20 = arith.constant 0 : index
    %c0_21 = arith.constant 0 : index
    %c0_22 = arith.constant 0 : index
    %21 = vector.load %arg4[%c0_20, %c0_21, %c0_22] : memref<1x32x64xf32, #tpu.memory_space<vmem>>, vector<1x32x64xf32>
    %22 = vector.shape_cast %21 : vector<1x32x64xf32> to vector<32x64xf32>
    %23 = vector.shape_cast %20 : vector<32x64xf32> to vector<1x32x64xf32>
    tpu.vector_store %arg4[%c0_20, %c0_21, %c0_22], %23 {strides = array<i32>} : memref<1x32x64xf32, #tpu.memory_space<vmem>>, vector<1x32x64xf32>,
    return
  }
  func.func @transform_0(%arg0: i32) -> (i32, i32, i32, i32) {
    %c0_i32 = arith.constant 0 : i32
    %c0_i32_0 = arith.constant 0 : i32
    %c0_i32_1 = arith.constant 0 : i32
    %c0_i32_2 = arith.constant 0 : i32
    return %arg0, %c0_i32, %c0_i32_0, %c0_i32_1 : i32, i32, i32, i32
  }
  func.func @transform_1(%arg0: i32) -> (i32, i32) {
    %c0_i32 = arith.constant 0 : i32
    %c0_i32_0 = arith.constant 0 : i32
    %c0_i32_1 = arith.constant 0 : i32
    return %c0_i32, %c0_i32_0 : i32, i32
  }
  func.func @transform_2(%arg0: i32) -> (i32, i32) {
    %c0_i32 = arith.constant 0 : i32
    %c0_i32_0 = arith.constant 0 : i32
    %c0_i32_1 = arith.constant 0 : i32
    return %c0_i32, %c0_i32_0 : i32, i32
  }
  func.func @transform_3(%arg0: i32) -> (i32, i32, i32) {
    %c0_i32 = arith.constant 0 : i32
    %c0_i32_0 = arith.constant 0 : i32
    %c0_i32_1 = arith.constant 0 : i32
    return %arg0, %c0_i32, %c0_i32_0 : i32, i32, i32
  }
}

module attributes {stable_mosaic.version = 11 : i64} {
  func.func @_head_kernel(%arg0: i32, %arg1: memref<2x2048xf32, #tpu.memory_space<vmem>>, %arg2: memref<2048x128xbf16, #tpu.memory_space<vmem>>, %arg3: memref<1x128xf32, #tpu.memory_space<vmem>>, %arg4: memref<128x35xf32, #tpu.memory_space<vmem>>, %arg5: memref<1x35xf32, #tpu.memory_space<vmem>>, %arg6: memref<2x35xf32, #tpu.memory_space<vmem>>, %arg7: memref<2x35xf32, #tpu.memory_space<vmem>>) attributes {dimension_semantics = [#tpu.dimension_semantics<arbitrary>], iteration_bounds = array<i64: 1>, scalar_prefetch = 0 : i64, scratch_operands = 0 : i64, tpu.core_type = #tpu.core_type<tc>, window_params = [{pipeline_mode = #tpu.pipeline_mode<synchronous>, transform_indices = @transform_0, window_bounds = array<i64: 2, 2048>}, {pipeline_mode = #tpu.pipeline_mode<synchronous>, transform_indices = @transform_1, window_bounds = array<i64: 2048, 128>}, {pipeline_mode = #tpu.pipeline_mode<synchronous>, transform_indices = @transform_2, window_bounds = array<i64: 1, 128>}, {pipeline_mode = #tpu.pipeline_mode<synchronous>, transform_indices = @transform_3, window_bounds = array<i64: 128, 35>}, {pipeline_mode = #tpu.pipeline_mode<synchronous>, transform_indices = @transform_4, window_bounds = array<i64: 1, 35>}, {pipeline_mode = #tpu.pipeline_mode<synchronous>, transform_indices = @transform_5, window_bounds = array<i64: 2, 35>}, {pipeline_mode = #tpu.pipeline_mode<synchronous>, transform_indices = @transform_6, window_bounds = array<i64: 2, 35>}]} {
    %c0 = arith.constant 0 : index
    %c0_0 = arith.constant 0 : index
    %0 = vector.load %arg1[%c0, %c0_0] : memref<2x2048xf32, #tpu.memory_space<vmem>>, vector<2x2048xf32>
    %1 = arith.truncf %0 : vector<2x2048xf32> to vector<2x2048xbf16>
    %c0_1 = arith.constant 0 : index
    %c0_2 = arith.constant 0 : index
    %2 = vector.load %arg2[%c0_1, %c0_2] : memref<2048x128xbf16, #tpu.memory_space<vmem>>, vector<2048x128xbf16>
    %cst = arith.constant dense<0.000000e+00> : vector<2x128xf32>
    %3 = tpu.matmul %1, %2, %cst {dimension_numbers = #tpu.dot_dimension_numbers<[1], [0], [0], [1], [0, 0, 1, 1], [], []>} : vector<2x2048xbf16>, vector<2048x128xbf16>, vector<2x128xf32> -> vector<2x128xf32>
    %c0_3 = arith.constant 0 : index
    %c0_4 = arith.constant 0 : index
    %4 = vector.load %arg3[%c0_3, %c0_4] : memref<1x128xf32, #tpu.memory_space<vmem>>, vector<1x128xf32>
    %5 = vector.broadcast %4 : vector<1x128xf32> to vector<2x128xf32>
    %6 = arith.addf %3, %5 : vector<2x128xf32>
    %c0_5 = arith.constant 0 : index
    %c0_6 = arith.constant 0 : index
    %7 = vector.load %arg4[%c0_5, %c0_6] : memref<128x35xf32, #tpu.memory_space<vmem>>, vector<128x35xf32>
    %cst_7 = arith.constant dense<0.000000e+00> : vector<2x35xf32>
    %8 = tpu.matmul %6, %7, %cst_7 {dimension_numbers = #tpu.dot_dimension_numbers<[1], [0], [0], [1], [0, 0, 1, 1], [], []>} : vector<2x128xf32>, vector<128x35xf32>, vector<2x35xf32> -> vector<2x35xf32>
    %c0_8 = arith.constant 0 : index
    %c0_9 = arith.constant 0 : index
    %9 = vector.load %arg5[%c0_8, %c0_9] : memref<1x35xf32, #tpu.memory_space<vmem>>, vector<1x35xf32>
    %10 = vector.broadcast %9 : vector<1x35xf32> to vector<2x35xf32>
    %11 = arith.addf %8, %10 : vector<2x35xf32>
    %c0_10 = arith.constant 0 : index
    %c0_11 = arith.constant 0 : index
    %12 = vector.load %arg6[%c0_10, %c0_11] : memref<2x35xf32, #tpu.memory_space<vmem>>, vector<2x35xf32>
    tpu.vector_store %arg6[%c0_10, %c0_11], %11 {strides = array<i32>} : memref<2x35xf32, #tpu.memory_space<vmem>>, vector<2x35xf32>,
    %cst_12 = arith.constant dense<0xFF800000> : vector<2xf32>
    %13 = vector.multi_reduction <maximumf>, %11, %cst_12 [1] : vector<2x35xf32> to vector<2xf32>
    %14 = vector.shape_cast %13 : vector<2xf32> to vector<2x1xf32>
    %15 = vector.broadcast %14 : vector<2x1xf32> to vector<2x35xf32>
    %16 = arith.subf %11, %15 : vector<2x35xf32>
    %17 = math.exp %16 : vector<2x35xf32>
    %cst_13 = arith.constant dense<0.000000e+00> : vector<2xf32>
    %18 = vector.multi_reduction <add>, %17, %cst_13 [1] : vector<2x35xf32> to vector<2xf32>
    %19 = vector.shape_cast %18 : vector<2xf32> to vector<2x1xf32>
    %20 = vector.broadcast %19 : vector<2x1xf32> to vector<2x35xf32>
    %21 = arith.divf %17, %20 : vector<2x35xf32>
    %c0_14 = arith.constant 0 : index
    %c0_15 = arith.constant 0 : index
    %22 = vector.load %arg7[%c0_14, %c0_15] : memref<2x35xf32, #tpu.memory_space<vmem>>, vector<2x35xf32>
    tpu.vector_store %arg7[%c0_14, %c0_15], %21 {strides = array<i32>} : memref<2x35xf32, #tpu.memory_space<vmem>>, vector<2x35xf32>,
    return
  }
  func.func @transform_0(%arg0: i32) -> (i32, i32) {
    %c0_i32 = arith.constant 0 : i32
    %c0_i32_0 = arith.constant 0 : i32
    %c0_i32_1 = arith.constant 0 : i32
    return %c0_i32, %c0_i32_0 : i32, i32
  }
  func.func @transform_1(%arg0: i32) -> (i32, i32) {
    %c0_i32 = arith.constant 0 : i32
    %c0_i32_0 = arith.constant 0 : i32
    %c0_i32_1 = arith.constant 0 : i32
    return %c0_i32, %c0_i32_0 : i32, i32
  }
  func.func @transform_2(%arg0: i32) -> (i32, i32) {
    %c0_i32 = arith.constant 0 : i32
    %c0_i32_0 = arith.constant 0 : i32
    %c0_i32_1 = arith.constant 0 : i32
    return %c0_i32, %c0_i32_0 : i32, i32
  }
  func.func @transform_3(%arg0: i32) -> (i32, i32) {
    %c0_i32 = arith.constant 0 : i32
    %c0_i32_0 = arith.constant 0 : i32
    %c0_i32_1 = arith.constant 0 : i32
    return %c0_i32, %c0_i32_0 : i32, i32
  }
  func.func @transform_4(%arg0: i32) -> (i32, i32) {
    %c0_i32 = arith.constant 0 : i32
    %c0_i32_0 = arith.constant 0 : i32
    %c0_i32_1 = arith.constant 0 : i32
    return %c0_i32, %c0_i32_0 : i32, i32
  }
  func.func @transform_5(%arg0: i32) -> (i32, i32) {
    %c0_i32 = arith.constant 0 : i32
    %c0_i32_0 = arith.constant 0 : i32
    %c0_i32_1 = arith.constant 0 : i32
    return %c0_i32, %c0_i32_0 : i32, i32
  }
  func.func @transform_6(%arg0: i32) -> (i32, i32) {
    %c0_i32 = arith.constant 0 : i32
    %c0_i32_0 = arith.constant 0 : i32
    %c0_i32_1 = arith.constant 0 : i32
    return %c0_i32, %c0_i32_0 : i32, i32
  }
}

</mosaic_0001>

<bundles_post_ra>
// kernel: cnn_forward.3
= control target key start
LH: loop header
LB: loop body
LE: loop exit
PB: predicated region body
PF: predicated region fallthrough
CT: control target
= control target key end

     0   :  { %s1673_s12 = smov 0   ;;  %s1931_s0 = inlined_call_operand.vmem [shape: bf16[2,4,27,1024], index: 0, kind: input, shape index: {}]   ;;  %s1932_s1 = inlined_call_operand.vmem [shape: bf16[16,27], index: 1, kind: input, shape index: {}]   ;;  %s1933_s2 = inlined_call_operand.vmem [shape: f32[16,1], index: 2, kind: input, shape index: {}]   ;;  %s1934_s3 = inlined_call_operand.vmem [shape: f32[2,16,1024], index: 3, kind: output, shape index: {}]  }
   0x1 LB: > { %s1489_s13 = sadd.s32 4294967295, %s1649_s12   ;;  %p1493_p0 = scmp.ge.s32.totalorder %s1649_s12, 1  ;;  %s1649_s12 = sphi %s1673_s12, %s13_s12  }
   0x2   : > { %p137_p1 = scmp.lt.s32.totalorder %s1649_s12, 3 }
   0x4   : > { %p138_p2 = pnand %p1493_p0, %p137_p1 }
   0x5   : > { %p161_p3 = scmp.lt.s32.totalorder (!%p138_p2), %s1489_s13, 1  ;;  %vm271_vm0 = vcmask (!%p138_p2), 1044480   ;;  %v1651_v0 = vmov (!%p138_p2), 0   ;;  %v1374_v1 = vld [vmem:[%s1933_s2] sm:$0xff] (!%p138_p2)  ;;  %vm272_vm1 = vcmask (!%p138_p2), 1045504   ;;  %v1652_v2 = vmov (!%p138_p2), 65535  }
   0x6   : > { %141 = sbr.rel (%p138_p2) target bundleno = 307 (0x133), region = 32  ;;  %331 = vmatprep.mubr.bf16.mxu0 (!%p138_p2), %v1651_v0  ;;  %374 = vmatprep.mubr.bf16.mxu1 (!%p138_p2), %v1651_v0  ;;  %v273_v3 = vsel (!%p138_p2), %vm271_vm0, 4294967295, %v1652_v2  ;;  %v1375_v4 = vld [vmem:[%s1933_s2 + $0x8] sm:$0xff] (!%p138_p2)  ;;  %v1723_v37 = vld [vmem:[%s1932_s1] sm:$0xff] (!%p138_p2)   ;;  %vm267_vm2 = vcmask (!%p138_p2), 220160  }
   0x7   : > { %1641 = vset.pattern.permute.xlu0 (!%p138_p2), %v1651_v0  ;;  %v1704_v13 = vsel (!%p138_p2), %vm272_vm1, %v273_v3, 0 }
   0x8   : > { %1378 = vperm.xlu0 (!%p138_p2), %1641, %v1374_v1  }
   0xc   : > { %1383 = vperm.xlu0 (!%p138_p2), %1641, %v1375_v4  }
   0xd   : > { %s1936_s13 = smov (!%p161_p3, %s1489_s13), 1 }
   0xe   : > { %s1629_s16 = sshll.u32 %s1936_s13, 9  ;;  %s1630_s24 = sshll.u32 %s1936_s13, 7 }
   0xf   : > { %s1696_s21 = scalar_lea.vmem %s1931_s0, %s1629_s16  ;;  %s1887_s27 = scalar_lea.vmem %s1934_s3, %s1630_s24 }
  0x10   : > { %v174_v5 = vld [vmem:[%s1696_s21] sm:$0xff]  ;;  %v175_v7 = vld [vmem:[%s1696_s21 + $0x8] sm:$0xff]  ;;  %v176_v20 = vld [vmem:[%s1696_s21 + $0x10] sm:$0xff] }
  0x11   : > { %v178_v6 = vld [vmem:[%s1696_s21 + $0x20] sm:$0xff]  ;;  %v179_v9 = vld [vmem:[%s1696_s21 + $0x28] sm:$0xff]  ;;  %v180_v23 = vld [vmem:[%s1696_s21 + $0x30] sm:$0xff] }
  0x12   : > { %v1500_v8 = vcombine.high %v174_v5, %v178_v6  ;;  %v1499_v10 = vcombine.low %v174_v5, %v178_v6  ;;  %v182_v11 = vld [vmem:[%s1696_s21 + $0x40] sm:$0xff]  ;;  %v1502_v14 = vcombine.high %v175_v7, %v179_v9  ;;  %v1501_v15 = vcombine.low %v175_v7, %v179_v9  ;;  %v183_v17 = vld [vmem:[%s1696_s21 + $0x48] sm:$0xff]  ;;  %v177_v24 = vld [vmem:[%s1696_s21 + $0x18] sm:$0xff] }
  0x13   : > { %v186_v12 = vld [vmem:[%s1696_s21 + $0x60] sm:$0x33]  ;;  %v187_v18 = vld [vmem:[%s1696_s21 + $0x68] sm:$0x33]  ;;  %v181_v25 = vld [vmem:[%s1696_s21 + $0x38] sm:$0xff]  ;;  %v1504_v33 = vcombine.high %v176_v20, %v180_v23  ;;  %v1503_v39 = vcombine.low %v176_v20, %v180_v23 }
  0x14   : > { %v1508_v16 = vcombine.high %v182_v11, %v186_v12  ;;  %v1507_v19 = vcombine.low %v182_v11, %v186_v12  ;;  %299 = vmatprep.subr.bf16.mxu0 %v1500_v8  ;;  %v1510_v21 = vcombine.high %v183_v17, %v187_v18  ;;  %v1509_v22 = vcombine.low %v183_v17, %v187_v18  ;;  %v184_v28 = vld [vmem:[%s1696_s21 + $0x50] sm:$0xff]  ;;  %v185_v30 = vld [vmem:[%s1696_s21 + $0x58] sm:$0xff]  ;;  %v1519_v44 = vld [vmem:[%s1696_s21 + $0x80] sm:$0xff] }
  0x15   : > { %342 = vmatprep.subr.bf16.mxu1 %v1502_v14  ;;  %300 = vmatpush1.bf16.msra.mxu0 %v1499_v10  ;;  %v188_v29 = vld [vmem:[%s1696_s21 + $0x70] sm:$0x33]  ;;  %v189_v34 = vld [vmem:[%s1696_s21 + $0x78] sm:$0x33]  ;;  %v1506_v35 = vcombine.high %v177_v24, %v181_v25  ;;  %v1505_v41 = vcombine.low %v177_v24, %v181_v25  ;;  %v1523_v45 = vld [vmem:[%s1696_s21 + $0xa0] sm:$0xff] }
  0x16   : > { %v279_v26 = vand.u32 %v1508_v16, %v1704_v13  ;;  %v276_v27 = vand.u32 %v1507_v19, %v1704_v13  ;;  %343 = vmatpush1.bf16.msra.mxu1 %v1501_v15  ;;  %v285_v31 = vand.u32 %v1510_v21, %v1704_v13  ;;  %v282_v32 = vand.u32 %v1509_v22, %v1704_v13  ;;  %v1520_v47 = vld [vmem:[%s1696_s21 + $0x88] sm:$0xff]  ;;  %v1527_v48 = vld [vmem:[%s1696_s21 + $0xc0] sm:$0xff]  ;;  %v1521_v1 = vld [vmem:[%s1696_s21 + $0x90] sm:$0xff] }
  0x17   : > { %v1512_v36 = vcombine.high %v184_v28, %v188_v29  ;;  %v1514_v38 = vcombine.high %v185_v30, %v189_v34  ;;  %v1511_v40 = vcombine.low %v184_v28, %v188_v29  ;;  %v1513_v43 = vcombine.low %v185_v30, %v189_v34  ;;  %v1531_v49 = vld [vmem:[%s1696_s21 + $0xe0] sm:$0x33]  ;;  %v1524_v50 = vld [vmem:[%s1696_s21 + $0xa8] sm:$0xff]  ;;  %v1525_v2 = vld [vmem:[%s1696_s21 + $0xb0] sm:$0xff] }
  0x18   : > { %301 = vmatprep.subr.bf16.mxu0 %v279_v26  ;;  %344 = vmatprep.subr.bf16.mxu1 %v285_v31  ;;  %v1528_v51 = vld [vmem:[%s1696_s21 + $0xc8] sm:$0xff]  ;;  %v1536_v55 = vcombine.high %v1519_v44, %v1523_v45  ;;  %v1544_v56 = vcombine.high %v1527_v48, %v1531_v49  ;;  %v1538_v57 = vcombine.high %v1520_v47, %v1524_v50  ;;  %v1522_v4 = vld [vmem:[%s1696_s21 + $0x98] sm:$0xff]  ;;  %v1529_v5 = vld [vmem:[%s1696_s21 + $0xd0] sm:$0xff] }
  0x19   : > { %302 = vmatpush1.bf16.msra.mxu0 %v276_v27  ;;  %v291_v42 = vand.u32 %v1512_v36, %v1704_v13  ;;  %v297_v46 = vand.u32 %v1514_v38, %v1704_v13  ;;  %v1532_v52 = vld [vmem:[%s1696_s21 + $0xe8] sm:$0x33]  ;;  %v288_v53 = vand.u32 %v1511_v40, %v1704_v13  ;;  %v294_v54 = vand.u32 %v1513_v43, %v1704_v13  ;;  %v1533_v6 = vld [vmem:[%s1696_s21 + $0xf0] sm:$0x33]  ;;  %v1526_v7 = vld [vmem:[%s1696_s21 + $0xb8] sm:$0xff] }
  0x1a   : > { %345 = vmatpush1.bf16.msra.mxu1 %v282_v32  ;;  %385 = vmatprep.subr.bf16.mxu0 %v1504_v33  ;;  %v1546_v58 = vcombine.high %v1528_v51, %v1532_v52  ;;  %v1535_v59 = vcombine.low %v1519_v44, %v1523_v45  ;;  %v1543_v60 = vcombine.low %v1527_v48, %v1531_v49  ;;  %v1530_v8 = vld [vmem:[%s1696_s21 + $0xd8] sm:$0xff]  ;;  %v1555_v22 = vld [vmem:[%s1696_s21 + $0x100] sm:$0xff]  ;;  %v1556_v25 = vld [vmem:[%s1696_s21 + $0x108] sm:$0xff] }
  0x1b   : > { %428 = vmatprep.subr.bf16.mxu1 %v1506_v35  ;;  %v1537_v61 = vcombine.low %v1520_v47, %v1524_v50  ;;  %v564_v62 = vand.u32 %v1544_v56, %v1704_v13  ;;  %v1545_v63 = vcombine.low %v1528_v51, %v1532_v52  ;;  %v1534_v9 = vld [vmem:[%s1696_s21 + $0xf8] sm:$0x33]  ;;  %v1540_v12 = vcombine.high %v1521_v1, %v1525_v2  ;;  %v1559_v23 = vld [vmem:[%s1696_s21 + $0x120] sm:$0xff]  ;;  %v1560_v28 = vld [vmem:[%s1696_s21 + $0x128] sm:$0xff] }
  0x1c   : > { %1515 = vmatmul.mubr.msk.bf16.vlgmr.msra.gmra.mrb[0].mxu0 %vm267_vm2, %v1723_v37  ;;  %v570_v3 = vand.u32 %v1546_v58, %v1704_v13  ;;  %v561_v10 = vand.u32 %v1543_v60, %v1704_v13  ;;  %v1548_v14 = vcombine.high %v1529_v5, %v1533_v6  ;;  %v1542_v15 = vcombine.high %v1522_v4, %v1526_v7  ;;  %v1563_v26 = vld [vmem:[%s1696_s21 + $0x140] sm:$0xff]  ;;  %v1564_v29 = vld [vmem:[%s1696_s21 + $0x148] sm:$0xff]  ;;  %v1557_v43 = vld [vmem:[%s1696_s21 + $0x110] sm:$0xff] }
  0x1d   : > { %1516 = vmatmul.mubr.msk.bf16.vlgmr.msra.gmra.mrb[0].mxu1 %vm267_vm2, %v1723_v37  ;;  %386 = vmatpush1.bf16.msra.mxu0 %v1503_v39  ;;  %v567_v11 = vand.u32 %v1545_v63, %v1704_v13  ;;  %v1550_v16 = vcombine.high %v1530_v8, %v1534_v9  ;;  %v1539_v17 = vcombine.low %v1521_v1, %v1525_v2  ;;  %v1567_v27 = vld [vmem:[%s1696_s21 + $0x160] sm:$0x33]  ;;  %v1568_v30 = vld [vmem:[%s1696_s21 + $0x168] sm:$0x33]  ;;  %v1561_v44 = vld [vmem:[%s1696_s21 + $0x130] sm:$0xff] }
  0x1e   : > { %429 = vmatpush1.bf16.msra.mxu1 %v1505_v41  ;;  %387 = vmatprep.subr.bf16.mxu0 %v291_v42  ;;  %v1547_v18 = vcombine.low %v1529_v5, %v1533_v6  ;;  %v1541_v19 = vcombine.low %v1522_v4, %v1526_v7  ;;  %v576_v20 = vand.u32 %v1548_v14, %v1704_v13  ;;  %v1565_v47 = vld [vmem:[%s1696_s21 + $0x150] sm:$0xff]  ;;  %v1562_v49 = vld [vmem:[%s1696_s21 + $0x138] sm:$0xff]  ;;  %v1591_v63 = vld [vmem:[%s1696_s21 + $0x180] sm:$0xff] }
  0x1f   : > { %430 = vmatprep.subr.bf16.mxu1 %v297_v46  ;;  %417 = vmatprep.mubr.bf16.mxu0 %v1651_v0  ;;  %v1549_v21 = vcombine.low %v1530_v8, %v1534_v9  ;;  %v582_v24 = vand.u32 %v1550_v16, %v1704_v13  ;;  %v1572_v33 = vcombine.high %v1555_v22, %v1559_v23  ;;  %v1558_v46 = vld [vmem:[%s1696_s21 + $0x118] sm:$0xff]  ;;  %v1569_v48 = vld [vmem:[%s1696_s21 + $0x170] sm:$0x33]  ;;  %v1595_v1 = vld [vmem:[%s1696_s21 + $0x1a0] sm:$0xff] }
  0x20   : > { %460 = vmatprep.mubr.bf16.mxu1 %v1651_v0  ;;  %v573_v31 = vand.u32 %v1547_v18, %v1704_v13  ;;  %v1580_v34 = vcombine.high %v1563_v26, %v1567_v27  ;;  %v1574_v35 = vcombine.high %v1556_v25, %v1560_v28  ;;  %v1582_v36 = vcombine.high %v1564_v29, %v1568_v30  ;;  %v1566_v50 = vld [vmem:[%s1696_s21 + $0x158] sm:$0xff]  ;;  %v1599_v4 = vld [vmem:[%s1696_s21 + $0x1c0] sm:$0xff]  ;;  %v1596_v6 = vld [vmem:[%s1696_s21 + $0x1a8] sm:$0xff] }
  0x21   : > { %388 = vmatpush1.bf16.msra.mxu0 %v288_v53  ;;  %v579_v32 = vand.u32 %v1549_v21, %v1704_v13  ;;  %v1571_v38 = vcombine.low %v1555_v22, %v1559_v23  ;;  %v1579_v39 = vcombine.low %v1563_v26, %v1567_v27  ;;  %v1573_v40 = vcombine.low %v1556_v25, %v1560_v28  ;;  %v1570_v51 = vld [vmem:[%s1696_s21 + $0x178] sm:$0x33]  ;;  %v1603_v5 = vld [vmem:[%s1696_s21 + $0x1e0] sm:$0x33]  ;;  %v1600_v7 = vld [vmem:[%s1696_s21 + $0x1c8] sm:$0xff] }
  0x22   : > { %431 = vmatpush1.bf16.msra.mxu1 %v294_v54  ;;  %584 = vmatprep.subr.bf16.mxu0 %v1536_v55  ;;  %v865_v41 = vand.u32 %v1580_v34, %v1704_v13  ;;  %v1581_v42 = vcombine.low %v1564_v29, %v1568_v30  ;;  %v871_v45 = vand.u32 %v1582_v36, %v1704_v13  ;;  %v1604_v8 = vld [vmem:[%s1696_s21 + $0x1e8] sm:$0x33]  ;;  %v1593_v21 = vld [vmem:[%s1696_s21 + $0x190] sm:$0xff]  ;;  %v1598_v27 = vld [vmem:[%s1696_s21 + $0x1b8] sm:$0xff] }
  0x23   : > { %627 = vmatprep.subr.bf16.mxu1 %v1538_v57  ;;  %v862_v52 = vand.u32 %v1579_v39, %v1704_v13  ;;  %v1576_v54 = vcombine.high %v1557_v43, %v1561_v44  ;;  %v1584_v55 = vcombine.high %v1565_v47, %v1569_v48  ;;  %v1578_v56 = vcombine.high %v1558_v46, %v1562_v49  ;;  %v1597_v22 = vld [vmem:[%s1696_s21 + $0x1b0] sm:$0xff]  ;;  %v1602_v28 = vld [vmem:[%s1696_s21 + $0x1d8] sm:$0xff] }
  0x24   : > { %1517 = vmatmul.mubr.msk.bf16.vlgmr.msra.gmra.mrb[4].mxu0 %vm267_vm2, %v1723_v37  ;;  %v868_v53 = vand.u32 %v1581_v42, %v1704_v13  ;;  %v1586_v57 = vcombine.high %v1566_v50, %v1570_v51  ;;  %v1575_v58 = vcombine.low %v1557_v43, %v1561_v44  ;;  %v1577_v60 = vcombine.low %v1558_v46, %v1562_v49  ;;  %v1601_v25 = vld [vmem:[%s1696_s21 + $0x1d0] sm:$0xff]  ;;  %v1606_v29 = vld [vmem:[%s1696_s21 + $0x1f8] sm:$0x33] }
  0x25   : > { %1518 = vmatmul.mubr.msk.bf16.vlgmr.msra.gmra.mrb[4].mxu1 %vm267_vm2, %v1723_v37  ;;  %585 = vmatpush1.bf16.msra.mxu0 %v1535_v59  ;;  %v1583_v59 = vcombine.low %v1565_v47, %v1569_v48  ;;  %v1607_v16 = vcombine.low %v1591_v63, %v1595_v1  ;;  %v1605_v26 = vld [vmem:[%s1696_s21 + $0x1f0] sm:$0x33]  ;;  %v1611_v36 = vcombine.low %v1593_v21, %v1597_v22 }
  0x26   : > { %628 = vmatpush1.bf16.msra.mxu1 %v1537_v61  ;;  %586 = vmatprep.subr.bf16.mxu0 %v564_v62  ;;  %v877_v61 = vand.u32 %v1584_v55, %v1704_v13  ;;  %v1585_v62 = vcombine.low %v1566_v50, %v1570_v51  ;;  %v883_v2 = vand.u32 %v1586_v57, %v1704_v13 }
  0x27   : > { %629 = vmatprep.subr.bf16.mxu1 %v570_v3  ;;  %616 = vmatprep.mubr.bf16.mxu0 %v1651_v0  ;;  %v1592_v3 = vld [vmem:[%s1696_s21 + $0x188] sm:$0xff]  ;;  %v874_v9 = vand.u32 %v1583_v59, %v1704_v13 }
  0x28   : > { %659 = vmatprep.mubr.bf16.mxu1 %v1651_v0  ;;  %v1610_v14 = vcombine.high %v1592_v3, %v1596_v6  ;;  %v1609_v18 = vcombine.low %v1592_v3, %v1596_v6 }
  0x29   : > { %587 = vmatpush1.bf16.msra.mxu0 %v561_v10  ;;  %v880_v10 = vand.u32 %v1585_v62, %v1704_v13 }
  0x2a   : > { %630 = vmatpush1.bf16.msra.mxu1 %v567_v11  ;;  %670 = vmatprep.subr.bf16.mxu0 %v1540_v12  ;;  %v1608_v11 = vcombine.high %v1591_v63, %v1595_v1  ;;  %v1616_v12 = vcombine.high %v1599_v4, %v1603_v5 }
  0x2b   : > { %713 = vmatprep.subr.bf16.mxu1 %v1542_v15  ;;  %v1618_v15 = vcombine.high %v1600_v7, %v1604_v8 }
  0x2c   : > { %1551 = vmatmul.mubr.msk.bf16.vlgmr.msra.gmra.mrb[8].mxu0 %vm267_vm2, %v1723_v37 }
  0x2d   : > { %1552 = vmatmul.mubr.msk.bf16.vlgmr.msra.gmra.mrb[8].mxu1 %vm267_vm2, %v1723_v37  ;;  %671 = vmatpush1.bf16.msra.mxu0 %v1539_v17  ;;  %v1615_v17 = vcombine.low %v1599_v4, %v1603_v5  ;;  %v1172_v23 = vand.u32 %v1618_v15, %v1704_v13 }
  0x2e   : > { %714 = vmatpush1.bf16.msra.mxu1 %v1541_v19  ;;  %672 = vmatprep.subr.bf16.mxu0 %v576_v20  ;;  %v1166_v19 = vand.u32 %v1616_v12, %v1704_v13  ;;  %v1617_v20 = vcombine.low %v1600_v7, %v1604_v8 }
  0x2f   : > { %715 = vmatprep.subr.bf16.mxu1 %v582_v24  ;;  %702 = vmatprep.mubr.bf16.mxu0 %v1651_v0  ;;  %v1594_v24 = vld [vmem:[%s1696_s21 + $0x198] sm:$0xff]  ;;  %v1163_v30 = vand.u32 %v1615_v17, %v1704_v13 }
  0x30   : > { %745 = vmatprep.mubr.bf16.mxu1 %v1651_v0  ;;  %v1614_v34 = vcombine.high %v1594_v24, %v1598_v27  ;;  %v1613_v39 = vcombine.low %v1594_v24, %v1598_v27 }
  0x31   : > { %673 = vmatpush1.bf16.msra.mxu0 %v573_v31  ;;  %v1169_v31 = vand.u32 %v1617_v20, %v1704_v13 }
  0x32   : > { %716 = vmatpush1.bf16.msra.mxu1 %v579_v32  ;;  %885 = vmatprep.subr.bf16.mxu0 %v1572_v33  ;;  %v1612_v32 = vcombine.high %v1593_v21, %v1597_v22  ;;  %v1620_v33 = vcombine.high %v1601_v25, %v1605_v26 }
  0x33   : > { %928 = vmatprep.subr.bf16.mxu1 %v1574_v35  ;;  %v1622_v35 = vcombine.high %v1602_v28, %v1606_v29 }
  0x34   : > { %1553 = vmatmul.mubr.msk.bf16.vlgmr.msra.gmra.mrb[12].mxu0 %vm267_vm2, %v1723_v37 }
  0x35   : > { %1554 = vmatmul.mubr.msk.bf16.vlgmr.msra.gmra.mrb[12].mxu1 %vm267_vm2, %v1723_v37  ;;  %886 = vmatpush1.bf16.msra.mxu0 %v1571_v38  ;;  %v1619_v38 = vcombine.low %v1601_v25, %v1605_v26  ;;  %v1184_v42 = vand.u32 %v1622_v35, %v1704_v13 }
  0x36   : > { %929 = vmatpush1.bf16.msra.mxu1 %v1573_v40  ;;  %887 = vmatprep.subr.bf16.mxu0 %v865_v41  ;;  %v1178_v40 = vand.u32 %v1620_v33, %v1704_v13  ;;  %v1621_v41 = vcombine.low %v1602_v28, %v1606_v29 }
  0x37   : > { %930 = vmatprep.subr.bf16.mxu1 %v871_v45  ;;  %917 = vmatprep.mubr.bf16.mxu0 %v1651_v0  ;;  %v1175_v43 = vand.u32 %v1619_v38, %v1704_v13 }
  0x38   : > { %960 = vmatprep.mubr.bf16.mxu1 %v1651_v0  ;;  %v1181_v44 = vand.u32 %v1621_v41, %v1704_v13 }
  0x39   : > { %888 = vmatpush1.bf16.msra.mxu0 %v862_v52 }
  0x3a   : > { %931 = vmatpush1.bf16.msra.mxu1 %v868_v53  ;;  %971 = vmatprep.subr.bf16.mxu0 %v1576_v54 }
  0x3b   : > { %1014 = vmatprep.subr.bf16.mxu1 %v1578_v56 }
  0x3c   : > { %1587 = vmatmul.mubr.msk.bf16.vlgmr.msra.gmra.mrb[16].mxu0 %vm267_vm2, %v1723_v37 }
  0x3d   : > { %1588 = vmatmul.mubr.msk.bf16.vlgmr.msra.gmra.mrb[16].mxu1 %vm267_vm2, %v1723_v37  ;;  %972 = vmatpush1.bf16.msra.mxu0 %v1575_v58 }
  0x3e   : > { %1015 = vmatpush1.bf16.msra.mxu1 %v1577_v60  ;;  %973 = vmatprep.subr.bf16.mxu0 %v877_v61 }
  0x3f   : > { %1016 = vmatprep.subr.bf16.mxu1 %v883_v2  ;;  %1003 = vmatprep.mubr.bf16.mxu0 %v1651_v0 }
  0x40   : > { %1046 = vmatprep.mubr.bf16.mxu1 %v1651_v0 }
  0x41   : > { %974 = vmatpush1.bf16.msra.mxu0 %v874_v9 }
  0x42   : > { %1017 = vmatpush1.bf16.msra.mxu1 %v880_v10  ;;  %1186 = vmatprep.subr.bf16.mxu0 %v1608_v11 }
  0x43   : > { %1229 = vmatprep.subr.bf16.mxu1 %v1610_v14 }
  0x44   : > { %1589 = vmatmul.mubr.msk.bf16.vlgmr.msra.gmra.mrb[20].mxu0 %vm267_vm2, %v1723_v37 }
  0x45   : > { %1590 = vmatmul.mubr.msk.bf16.vlgmr.msra.gmra.mrb[20].mxu1 %vm267_vm2, %v1723_v37  ;;  %1187 = vmatpush1.bf16.msra.mxu0 %v1607_v16 }
  0x46   : > { %1230 = vmatpush1.bf16.msra.mxu1 %v1609_v18  ;;  %1188 = vmatprep.subr.bf16.mxu0 %v1166_v19 }
  0x47   : > { %1231 = vmatprep.subr.bf16.mxu1 %v1172_v23  ;;  %1218 = vmatprep.mubr.bf16.mxu0 %v1651_v0 }
  0x48   : > { %1261 = vmatprep.mubr.bf16.mxu1 %v1651_v0 }
  0x49   : > { %1189 = vmatpush1.bf16.msra.mxu0 %v1163_v30 }
  0x4a   : > { %1232 = vmatpush1.bf16.msra.mxu1 %v1169_v31  ;;  %1272 = vmatprep.subr.bf16.mxu0 %v1612_v32 }
  0x4b   : > { %1315 = vmatprep.subr.bf16.mxu1 %v1614_v34 }
  0x4c   : > { %1623 = vmatmul.mubr.msk.bf16.vlgmr.msra.gmra.mrb[24].mxu0 %vm267_vm2, %v1723_v37 }
  0x4d   : > { %1624 = vmatmul.mubr.msk.bf16.vlgmr.msra.gmra.mrb[24].mxu1 %vm267_vm2, %v1723_v37  ;;  %1273 = vmatpush1.bf16.msra.mxu0 %v1611_v36 }
  0x4e   : > { %1316 = vmatpush1.bf16.msra.mxu1 %v1613_v39  ;;  %1274 = vmatprep.subr.bf16.mxu0 %v1178_v40 }
  0x4f   : > { %1317 = vmatprep.subr.bf16.mxu1 %v1184_v42  ;;  %1304 = vmatprep.mubr.bf16.mxu0 %v1651_v0 }
  0x50   : > { %1347 = vmatprep.mubr.bf16.mxu1 %v1651_v0 }
  0x51   : > { %1275 = vmatpush1.bf16.msra.mxu0 %v1175_v43 }
  0x52   : > { %1318 = vmatpush1.bf16.msra.mxu1 %v1181_v44 }
  0x54   : > { %1625 = vmatmul.mubr.msk.bf16.vlgmr.msra.gmra.mrb[28].mxu0 %vm267_vm2, %v1723_v37 }
  0x55   : > { %1626 = vmatmul.mubr.msk.bf16.vlgmr.msra.gmra.mrb[28].mxu1 %vm267_vm2, %v1723_v37 }
  0xef   : > { %v333_v45 = vpop.f32.mrb[0].mxu0 }
  0xf0   : > { %v376_v46 = vpop.f32.mrb[0].mxu1  ;;  %v335_v47 = vpop.f32.mrb[1].mxu0 }
  0xf1   : > { %v378_v48 = vpop.f32.mrb[1].mxu1  ;;  %v337_v49 = vpop.f32.mrb[2].mxu0 }
  0xf2   : > { %v380_v50 = vpop.f32.mrb[2].mxu1  ;;  %v339_v13 = vpop.f32.mrb[3].mxu0 }
  0xf3   : > { %v382_v51 = vpop.f32.mrb[3].mxu1 }
  0xf7   : > { %v419_v52 = vpop.f32.mrb[4].mxu0 }
  0xf8   : > { %v462_v53 = vpop.f32.mrb[4].mxu1  ;;  %v421_v54 = vpop.f32.mrb[5].mxu0 }
  0xf9   : > { %v1847_v0 = vpop.f32.mrb[5].mxu1  ;;  %v1849_v55 = vpop.f32.mrb[6].mxu0 }
  0xfa   : > { %v1851_v56 = vpop.f32.mrb[6].mxu1  ;;  %v1853_v57 = vpop.f32.mrb[7].mxu0 }
  0xfb   : > { %v1855_v37 = vpop.f32.mrb[7].mxu1 }
  0xff   : > { %v618_v58 = vpop.f32.mrb[8].mxu0 }
 0x100   : > { %v756_v59 = vmax.f32 %v333_v45, %v618_v58  ;;  %v661_v60 = vpop.f32.mrb[8].mxu1  ;;  %v620_v61 = vpop.f32.mrb[9].mxu0 }
 0x101   : > { %v758_v62 = vmax.f32 %v376_v46, %v661_v60  ;;  %v757_v63 = vmax.f32 %v335_v47, %v620_v61  ;;  %v663_v1 = vpop.f32.mrb[9].mxu1  ;;  %v622_v2 = vpop.f32.mrb[10].mxu0 }
 0x102   : > { %v759_v3 = vmax.f32 %v378_v48, %v663_v1  ;;  %v764_v4 = vmax.f32 %v337_v49, %v622_v2  ;;  %v665_v5 = vpop.f32.mrb[10].mxu1  ;;  %v624_v6 = vpop.f32.mrb[11].mxu0 }
 0x103   : > { %v766_v7 = vmax.f32 %v380_v50, %v665_v5  ;;  %v765_v8 = vmax.f32 %v339_v13, %v624_v6  ;;  %v667_v9 = vpop.f32.mrb[11].mxu1  ;;  %v1862_v46 = vpop.permute.xlu0 %1378 }
 0x104   : > { %v767_v10 = vmax.f32 %v382_v51, %v667_v9 }
 0x107   : > { %v704_v11 = vpop.f32.mrb[12].mxu0  ;;  %v1880_v60 = vpop.permute.xlu0 %1383 }
 0x108   : > { %v760_v12 = vmax.f32 %v419_v52, %v704_v11  ;;  %v747_v14 = vpop.f32.mrb[12].mxu1  ;;  %v706_v15 = vpop.f32.mrb[13].mxu0 }
 0x109   : > { %v762_v16 = vmax.f32 %v462_v53, %v747_v14  ;;  %v761_v17 = vmax.f32 %v421_v54, %v706_v15  ;;  %v749_v18 = vpop.f32.mrb[13].mxu1  ;;  %v708_v19 = vpop.f32.mrb[14].mxu0 }
 0x10a   : > { %v763_v20 = vmax.f32 %v1847_v0, %v749_v18  ;;  %v768_v21 = vmax.f32 %v1849_v55, %v708_v19  ;;  %v751_v22 = vpop.f32.mrb[14].mxu1  ;;  %v710_v23 = vpop.f32.mrb[15].mxu0 }
 0x10b   : > { %v770_v24 = vmax.f32 %v1851_v56, %v751_v22  ;;  %v769_v25 = vmax.f32 %v1853_v57, %v710_v23  ;;  %v753_v26 = vpop.f32.mrb[15].mxu1 }
 0x10c   : > { %v771_v27 = vmax.f32 %v1855_v37, %v753_v26 }
 0x10f   : > { %v919_v28 = vpop.f32.mrb[16].mxu0 }
 0x110   : > { %v1057_v29 = vmax.f32 %v756_v59, %v919_v28  ;;  %v962_v30 = vpop.f32.mrb[16].mxu1  ;;  %v921_v31 = vpop.f32.mrb[17].mxu0 }
 0x111   : > { %v1059_v32 = vmax.f32 %v758_v62, %v962_v30  ;;  %v1058_v33 = vmax.f32 %v757_v63, %v921_v31  ;;  %v964_v34 = vpop.f32.mrb[17].mxu1  ;;  %v923_v35 = vpop.f32.mrb[18].mxu0 }
 0x112   : > { %v1060_v36 = vmax.f32 %v759_v3, %v964_v34  ;;  %v1065_v38 = vmax.f32 %v764_v4, %v923_v35  ;;  %v966_v39 = vpop.f32.mrb[18].mxu1  ;;  %v925_v40 = vpop.f32.mrb[19].mxu0 }
 0x113   : > { %v1067_v41 = vmax.f32 %v766_v7, %v966_v39  ;;  %v1066_v42 = vmax.f32 %v765_v8, %v925_v40  ;;  %v968_v43 = vpop.f32.mrb[19].mxu1 }
 0x114   : > { %v1068_v44 = vmax.f32 %v767_v10, %v968_v43 }
 0x117   : > { %v1005_v45 = vpop.f32.mrb[20].mxu0 }
 0x118   : > { %v1864_v47 = vmax.f32 %v760_v12, %v1005_v45  ;;  %v1048_v48 = vpop.f32.mrb[20].mxu1  ;;  %v1007_v49 = vpop.f32.mrb[21].mxu0 }
 0x119   : > { %v1866_v50 = vmax.f32 %v762_v16, %v1048_v48  ;;  %v1868_v13 = vmax.f32 %v761_v17, %v1007_v49  ;;  %v1050_v51 = vpop.f32.mrb[21].mxu1  ;;  %v1009_v52 = vpop.f32.mrb[22].mxu0 }
 0x11a   : > { %v1870_v53 = vmax.f32 %v763_v20, %v1050_v51  ;;  %v1872_v54 = vmax.f32 %v768_v21, %v1009_v52  ;;  %v1052_v0 = vpop.f32.mrb[22].mxu1  ;;  %v1011_v55 = vpop.f32.mrb[23].mxu0 }
 0x11b   : > { %v1874_v56 = vmax.f32 %v770_v24, %v1052_v0  ;;  %v1876_v57 = vmax.f32 %v769_v25, %v1011_v55  ;;  %v1054_v37 = vpop.f32.mrb[23].mxu1 }
 0x11c   : > { %v1878_v58 = vmax.f32 %v771_v27, %v1054_v37 }
 0x11f   : > { %v1220_v59 = vpop.f32.mrb[24].mxu0 }
 0x120   : > { %v1358_v61 = vmax.f32 %v1057_v29, %v1220_v59  ;;  %v1263_v62 = vpop.f32.mrb[24].mxu1  ;;  %v1222_v63 = vpop.f32.mrb[25].mxu0 }
 0x121   : > { %v1360_v1 = vmax.f32 %v1059_v32, %v1263_v62  ;;  %v1359_v2 = vmax.f32 %v1058_v33, %v1222_v63  ;;  %v1265_v3 = vpop.f32.mrb[25].mxu1  ;;  %v1224_v4 = vpop.f32.mrb[26].mxu0 }
 0x122   : > { %v1386_v5 = vadd.f32 %v1862_v46, %v1358_v61  ;;  %v1361_v6 = vmax.f32 %v1060_v36, %v1265_v3  ;;  %v1366_v7 = vmax.f32 %v1065_v38, %v1224_v4  ;;  %v1267_v8 = vpop.f32.mrb[26].mxu1  ;;  %v1226_v9 = vpop.f32.mrb[27].mxu0 }
 0x123   : > { %v1388_v10 = vadd.f32 %v1862_v46, %v1360_v1  ;;  %v1387_v11 = vadd.f32 %v1862_v46, %v1359_v2  ;;  %v1368_v12 = vmax.f32 %v1067_v41, %v1267_v8  ;;  %v1367_v14 = vmax.f32 %v1066_v42, %v1226_v9  ;;  %v1269_v15 = vpop.f32.mrb[27].mxu1 }
 0x124   : > { %v1402_v16 = vmax.f32 %v1386_v5, 0.0  ;;  %v1389_v17 = vadd.f32 %v1862_v46, %v1361_v6  ;;  %v1369_v18 = vmax.f32 %v1068_v44, %v1269_v15  ;;  %v1394_v19 = vadd.f32 %v1880_v60, %v1366_v7 }
 0x125   : > { %v1404_v20 = vmax.f32 %v1388_v10, 0.0  ;;  %v1403_v21 = vmax.f32 %v1387_v11, 0.0  ;;  %v1395_v22 = vadd.f32 %v1880_v60, %v1367_v14  ;;  %v1396_v23 = vadd.f32 %v1880_v60, %v1368_v12 }
 0x126   : > { %1418 = vst [vmem:[%s1887_s27] sm:$0xff] %v1402_v16  ;;  %v1405_v24 = vmax.f32 %v1389_v17, 0.0  ;;  %v1397_v25 = vadd.f32 %v1880_v60, %v1369_v18  ;;  %v1410_v26 = vmax.f32 %v1394_v19, 0.0 }
 0x127   : > { %1420 = vst [vmem:[%s1887_s27 + $0x10] sm:$0xff] %v1404_v20  ;;  %1419 = vst [vmem:[%s1887_s27 + $0x8] sm:$0xff] %v1403_v21  ;;  %v1411_v27 = vmax.f32 %v1395_v22, 0.0  ;;  %v1412_v28 = vmax.f32 %v1396_v23, 0.0  ;;  %v1306_v29 = vpop.f32.mrb[28].mxu0 }
 0x128   : > { %1421 = vst [vmem:[%s1887_s27 + $0x18] sm:$0xff] %v1405_v24  ;;  %v1413_v30 = vmax.f32 %v1397_v25, 0.0  ;;  %1426 = vst [vmem:[%s1887_s27 + $0x40] sm:$0xff] %v1410_v26  ;;  %v1362_v31 = vmax.f32 %v1864_v47, %v1306_v29  ;;  %v1349_v32 = vpop.f32.mrb[28].mxu1  ;;  %v1308_v33 = vpop.f32.mrb[29].mxu0 }
 0x129   : > { %1427 = vst [vmem:[%s1887_s27 + $0x48] sm:$0xff] %v1411_v27  ;;  %1428 = vst [vmem:[%s1887_s27 + $0x50] sm:$0xff] %v1412_v28  ;;  %v1364_v34 = vmax.f32 %v1866_v50, %v1349_v32  ;;  %v1363_v35 = vmax.f32 %v1868_v13, %v1308_v33  ;;  %v1351_v36 = vpop.f32.mrb[29].mxu1  ;;  %v1310_v38 = vpop.f32.mrb[30].mxu0 }
 0x12a   : > { %1429 = vst [vmem:[%s1887_s27 + $0x58] sm:$0xff] %v1413_v30  ;;  %v1390_v39 = vadd.f32 %v1862_v46, %v1362_v31  ;;  %v1365_v40 = vmax.f32 %v1870_v53, %v1351_v36  ;;  %v1370_v41 = vmax.f32 %v1872_v54, %v1310_v38  ;;  %v1353_v42 = vpop.f32.mrb[30].mxu1  ;;  %v1312_v43 = vpop.f32.mrb[31].mxu0 }
 0x12b   : > { %v1392_v44 = vadd.f32 %v1862_v46, %v1364_v34  ;;  %v1391_v45 = vadd.f32 %v1862_v46, %v1363_v35  ;;  %v1372_v47 = vmax.f32 %v1874_v56, %v1353_v42  ;;  %v1371_v48 = vmax.f32 %v1876_v57, %v1312_v43  ;;  %v1355_v49 = vpop.f32.mrb[31].mxu1 }
 0x12c   : > { %v1406_v50 = vmax.f32 %v1390_v39, 0.0  ;;  %v1393_v13 = vadd.f32 %v1862_v46, %v1365_v40  ;;  %v1398_v51 = vadd.f32 %v1880_v60, %v1370_v41  ;;  %v1373_v52 = vmax.f32 %v1878_v58, %v1355_v49 }
 0x12d   : > { %v1408_v53 = vmax.f32 %v1392_v44, 0.0  ;;  %v1407_v54 = vmax.f32 %v1391_v45, 0.0  ;;  %v1400_v0 = vadd.f32 %v1880_v60, %v1372_v47  ;;  %v1399_v55 = vadd.f32 %v1880_v60, %v1371_v48 }
 0x12e   : > { %1422 = vst [vmem:[%s1887_s27 + $0x20] sm:$0xff] %v1406_v50  ;;  %v1409_v56 = vmax.f32 %v1393_v13, 0.0  ;;  %v1414_v57 = vmax.f32 %v1398_v51, 0.0  ;;  %v1401_v37 = vadd.f32 %v1880_v60, %v1373_v52 }
 0x12f   : > { %1424 = vst [vmem:[%s1887_s27 + $0x30] sm:$0xff] %v1408_v53  ;;  %1423 = vst [vmem:[%s1887_s27 + $0x28] sm:$0xff] %v1407_v54  ;;  %v1416_v46 = vmax.f32 %v1400_v0, 0.0  ;;  %v1415_v59 = vmax.f32 %v1399_v55, 0.0 }
 0x130   : > { %1425 = vst [vmem:[%s1887_s27 + $0x38] sm:$0xff] %v1409_v56  ;;  %1430 = vst [vmem:[%s1887_s27 + $0x60] sm:$0xff] %v1414_v57  ;;  %v1417_v58 = vmax.f32 %v1401_v37, 0.0 }
 0x131   : > { %1432 = vst [vmem:[%s1887_s27 + $0x70] sm:$0xff] %v1416_v46  ;;  %1431 = vst [vmem:[%s1887_s27 + $0x68] sm:$0xff] %v1415_v59 }
 0x132   : > { %1433 = vst [vmem:[%s1887_s27 + $0x78] sm:$0xff] %v1417_v58 }
 0x133 PF: > { %s13_s12 = sadd.s32 1, %s1649_s12  }
 0x134   : > { %p10_p4 = scmp.ge.s32.totalorder %s13_s12, 4  }
 0x136   :  { %12 = sbr.rel (!%p10_p4) target bundleno = 1 (0x1), region = 65 }

// kernel: cnn_forward.4
= control target key start
LH: loop header
LB: loop body
LE: loop exit
PB: predicated region body
PF: predicated region fallthrough
CT: control target
= control target key end

     0   :  { %s988_s12 = smov 0   ;;  %s1139_s0 = inlined_call_operand.vmem [shape: bf16[2,4,144,64], index: 0, kind: input, shape index: {}]   ;;  %s1140_s1 = inlined_call_operand.vmem [shape: bf16[32,144], index: 1, kind: input, shape index: {}]   ;;  %s1141_s2 = inlined_call_operand.vmem [shape: f32[32,1], index: 2, kind: input, shape index: {}]   ;;  %s1142_s3 = inlined_call_operand.vmem [shape: f32[2,32,64], index: 3, kind: output, shape index: {}]  }
   0x1 LB: > { %s792_s13 = sadd.s32 4294967295, %s965_s12   ;;  %p796_p0 = scmp.ge.s32.totalorder %s965_s12, 1  ;;  %s965_s12 = sphi %s988_s12, %s13_s12  }
   0x2   : > { %p137_p1 = scmp.lt.s32.totalorder %s965_s12, 3 }
   0x4   : > { %p138_p2 = pnand %p796_p0, %p137_p1 }
   0x5   : > { %p161_p3 = scmp.lt.s32.totalorder (!%p138_p2), %s792_s13, 1  ;;  %v999_v0 = vld [vmem:[%s1140_s1 + $0x4] ss:$8 sps:$4 sm:$0xff] (!%p138_p2)   ;;  %v967_v1 = vmov (!%p138_p2), 0   ;;  %vm266_vm0 = vcmask (!%p138_p2), 130048   ;;  %v702_v3 = vld [vmem:[%s1141_s2 + $0x10] sm:$0xff] (!%p138_p2) }
   0x6   : > { %141 = sbr.rel (%p138_p2) target bundleno = 320 (0x140), region = 32  ;;  %273 = vmatprep.subr.bf16.mxu0 (!%p138_p2), %v967_v1  ;;  %395 = vmatprep.subr.bf16.mxu1 (!%p138_p2), %v967_v1  ;;  %v700_v2 = vld [vmem:[%s1141_s2] sm:$0xff] (!%p138_p2)  ;;  %v701_v4 = vld [vmem:[%s1141_s2 + $0x8] sm:$0xff] (!%p138_p2)  ;;  %v703_v5 = vld [vmem:[%s1141_s2 + $0x18] sm:$0xff] (!%p138_p2)  ;;  %vm732_vm1 = vcmask (!%p138_p2), 523264  }
   0x7   : > { %813 = vmatprep.mubr.msk.bf16.mxu0 (!%p138_p2), %vm266_vm0, %v999_v0  ;;  %842 = vmatprep.mubr.msk.bf16.mxu1 (!%p138_p2), %vm266_vm0, %v999_v0  ;;  %v1066_v24 = vld [vmem:[%s1140_s1] ss:$8 sps:$4 sm:$0xff] (!%p138_p2)   ;;  %v1075_v27 = vld [vmem:[%s1140_s1 + $0x14] ss:$8 sps:$4 sm:$0xff] (!%p138_p2)   ;;  %v952_v30 = vld [vmem:[%s1140_s1 + $0x10] ss:$8 sps:$4 sm:$0xff] (!%p138_p2)  }
   0x8   : > { %915 = vset.pattern.permute.xlu0 (!%p138_p2), %v967_v1  ;;  %916 = vset.pattern.permute.xlu1 (!%p138_p2), %v967_v1 }
   0x9   : > { %706 = vperm.xlu0 (!%p138_p2), %915, %v700_v2   ;;  %716 = vperm.xlu1 (!%p138_p2), %916, %v702_v3  }
   0xd   : > { %s1144_s13 = smov (!%p161_p3, %s792_s13), 1  ;;  %711 = vperm.xlu0 %915, %v701_v4   ;;  %721 = vperm.xlu1 %916, %v703_v5  }
   0xe   : > { %s905_s20 = smul.u32 288, %s1144_s13  ;;  %s904_s7 = sshll.u32 %s1144_s13, 5 }
   0xf   : > { %s170_s10 = scalar_lea.vmem %s1142_s3, %s904_s7 }
  0x10   : > { %s1027_s27 = scalar_lea.vmem %s1139_s0, %s905_s20 }
  0x11   : > { %v917_v6 = vld [vmem:[%s1027_s27] sm:$0xff]   ;;  %v918_v7 = vld [vmem:[%s1027_s27 + $0x48] sm:$0xff]   ;;  %v920_v9 = vld [vmem:[%s1027_s27 + $0x50] sm:$0xff]  }
  0x12   : > { %274 = vmatpush1.bf16.msra.mxu0 %v917_v6  ;;  %v919_v8 = vld [vmem:[%s1027_s27 + $0x8] sm:$0xff]   ;;  %396 = vmatpush1.bf16.msra.mxu1 %v918_v7  ;;  %v921_v10 = vld [vmem:[%s1027_s27 + $0x10] sm:$0xff]   ;;  %v922_v11 = vld [vmem:[%s1027_s27 + $0x58] sm:$0xff]  }
  0x13   : > { %275 = vmatprep.subr.bf16.mxu0 %v967_v1  ;;  %397 = vmatprep.subr.bf16.mxu1 %v967_v1  ;;  %v923_v12 = vld [vmem:[%s1027_s27 + $0x18] sm:$0xff]   ;;  %v924_v13 = vld [vmem:[%s1027_s27 + $0x60] sm:$0xff]   ;;  %v926_v15 = vld [vmem:[%s1027_s27 + $0x68] sm:$0xff]  }
  0x14   : > { %v925_v14 = vld [vmem:[%s1027_s27 + $0x20] sm:$0xff]   ;;  %v927_v16 = vld [vmem:[%s1027_s27 + $0x28] sm:$0xff]   ;;  %v928_v17 = vld [vmem:[%s1027_s27 + $0x70] sm:$0xff]  }
  0x15   : > { %v929_v18 = vld [vmem:[%s1027_s27 + $0x30] sm:$0xff]   ;;  %v930_v19 = vld [vmem:[%s1027_s27 + $0x78] sm:$0xff]   ;;  %v932_v21 = vld [vmem:[%s1027_s27 + $0x80] sm:$0xff]  }
  0x16   : > { %276 = vmatpush1.bf16.msra.mxu0 %v919_v8  ;;  %398 = vmatpush1.bf16.msra.mxu1 %v920_v9  ;;  %v931_v20 = vld [vmem:[%s1027_s27 + $0x38] sm:$0xff]   ;;  %v933_v22 = vld [vmem:[%s1027_s27 + $0x40] sm:$0xff]   ;;  %v934_v23 = vld [vmem:[%s1027_s27 + $0x88] sm:$0xff]  }
  0x17   : > { %277 = vmatprep.subr.bf16.mxu0 %v967_v1  ;;  %399 = vmatprep.subr.bf16.mxu1 %v967_v1  ;;  %v938_v25 = vld [vmem:[%s1027_s27 + $0x90] sm:$0xff]   ;;  %v939_v26 = vld [vmem:[%s1027_s27 + $0xd8] sm:$0xff]   ;;  %v941_v29 = vld [vmem:[%s1027_s27 + $0xe0] sm:$0xff]  }
  0x18   : > { %v940_v28 = vld [vmem:[%s1027_s27 + $0x98] sm:$0xff]   ;;  %v942_v31 = vld [vmem:[%s1027_s27 + $0xa0] sm:$0xff]   ;;  %v943_v32 = vld [vmem:[%s1027_s27 + $0xe8] sm:$0xff]  }
  0x19   : > { %v944_v33 = vld [vmem:[%s1027_s27 + $0xa8] sm:$0xff]   ;;  %v945_v34 = vld [vmem:[%s1027_s27 + $0xf0] sm:$0xff]   ;;  %v947_v36 = vld [vmem:[%s1027_s27 + $0xf8] sm:$0xff]  }
  0x1a   : > { %278 = vmatpush1.bf16.msra.mxu0 %v921_v10  ;;  %400 = vmatpush1.bf16.msra.mxu1 %v922_v11  ;;  %v946_v35 = vld [vmem:[%s1027_s27 + $0xb0] sm:$0xff]   ;;  %v948_v37 = vld [vmem:[%s1027_s27 + $0xb8] sm:$0xff]   ;;  %v949_v38 = vld [vmem:[%s1027_s27 + $0x100] sm:$0xff]  }
  0x1b   : > { %279 = vmatprep.subr.bf16.mxu0 %v967_v1  ;;  %401 = vmatprep.subr.bf16.mxu1 %v967_v1  ;;  %v953_v39 = vld [vmem:[%s1027_s27 + $0xc0] sm:$0xff]   ;;  %v954_v40 = vld [vmem:[%s1027_s27 + $0x108] sm:$0xff]   ;;  %v956_v42 = vld [vmem:[%s1027_s27 + $0x110] sm:$0xff]  }
  0x1c   : > { %v955_v41 = vld [vmem:[%s1027_s27 + $0xc8] sm:$0xff]   ;;  %v957_v43 = vld [vmem:[%s1027_s27 + $0xd0] sm:$0xff]   ;;  %v958_v44 = vld [vmem:[%s1027_s27 + $0x118] sm:$0xff]  }
  0x1e   : > { %280 = vmatpush1.bf16.msra.mxu0 %v923_v12  ;;  %402 = vmatpush1.bf16.msra.mxu1 %v924_v13 }
  0x1f   : > { %281 = vmatprep.subr.bf16.mxu0 %v967_v1  ;;  %403 = vmatprep.subr.bf16.mxu1 %v967_v1 }
  0x22   : > { %282 = vmatpush1.bf16.msra.mxu0 %v925_v14  ;;  %404 = vmatpush1.bf16.msra.mxu1 %v926_v15 }
  0x23   : > { %283 = vmatprep.subr.bf16.mxu0 %v967_v1  ;;  %405 = vmatprep.subr.bf16.mxu1 %v967_v1 }
  0x26   : > { %284 = vmatpush1.bf16.msra.mxu0 %v927_v16  ;;  %406 = vmatpush1.bf16.msra.mxu1 %v928_v17 }
  0x27   : > { %285 = vmatprep.subr.bf16.mxu0 %v967_v1  ;;  %407 = vmatprep.subr.bf16.mxu1 %v967_v1 }
  0x2a   : > { %286 = vmatpush1.bf16.msra.mxu0 %v929_v18  ;;  %408 = vmatpush1.bf16.msra.mxu1 %v930_v19 }
  0x2b   : > { %287 = vmatprep.subr.bf16.mxu0 %v967_v1  ;;  %409 = vmatprep.subr.bf16.mxu1 %v967_v1 }
  0x2e   : > { %288 = vmatpush1.bf16.msra.mxu0 %v931_v20  ;;  %410 = vmatpush1.bf16.msra.mxu1 %v932_v21 }
  0x2f   : > { %289 = vmatprep.subr.bf16.mxu0 %v967_v1  ;;  %411 = vmatprep.subr.bf16.mxu1 %v967_v1 }
  0x32   : > { %290 = vmatpush1.bf16.msra.mxu0 %v933_v22  ;;  %412 = vmatpush1.bf16.msra.mxu1 %v934_v23 }
  0x33   : > { %521 = vmatprep.subr.bf16.mxu0 %v967_v1  ;;  %647 = vmatprep.subr.bf16.mxu1 %v967_v1 }
  0x35   : > { %306 = vmatmul.mubr.bf16.vlgmr.msra.gmra.mrb[0].mxu0 %v1066_v24  ;;  %428 = vmatmul.mubr.bf16.vlgmr.msra.gmra.mrb[0].mxu1 %v1066_v24 }
  0x36   : > { %522 = vmatpush1.bf16.msra.mxu0 %v938_v25  ;;  %648 = vmatpush1.bf16.msra.mxu1 %v939_v26 }
  0x37   : > { %523 = vmatprep.subr.bf16.mxu0 %v967_v1  ;;  %649 = vmatprep.subr.bf16.mxu1 %v967_v1 }
  0x38   : > { %814 = vmatprep.mubr.msk.bf16.mxu0 %vm266_vm0, %v1075_v27  ;;  %843 = vmatprep.mubr.msk.bf16.mxu1 %vm266_vm0, %v1075_v27 }
  0x3a   : > { %524 = vmatpush1.bf16.msra.mxu0 %v940_v28  ;;  %650 = vmatpush1.bf16.msra.mxu1 %v941_v29 }
  0x3b   : > { %525 = vmatprep.subr.bf16.mxu0 %v967_v1  ;;  %651 = vmatprep.subr.bf16.mxu1 %v967_v1 }
  0x3d   : > { %314 = vmatmul.mubr.bf16.gmra.mrb[4].mxu0 %v952_v30  ;;  %436 = vmatmul.mubr.bf16.gmra.mrb[4].mxu1 %v952_v30 }
  0x3e   : > { %526 = vmatpush1.bf16.msra.mxu0 %v942_v31  ;;  %652 = vmatpush1.bf16.msra.mxu1 %v943_v32 }
  0x3f   : > { %527 = vmatprep.subr.bf16.mxu0 %v967_v1  ;;  %653 = vmatprep.subr.bf16.mxu1 %v967_v1 }
  0x40   : > { %871 = vmatprep.mubr.msk.bf16.mxu0 %vm266_vm0, %v999_v0  ;;  %900 = vmatprep.mubr.msk.bf16.mxu1 %vm266_vm0, %v999_v0 }
  0x42   : > { %528 = vmatpush1.bf16.msra.mxu0 %v944_v33  ;;  %654 = vmatpush1.bf16.msra.mxu1 %v945_v34 }
  0x43   : > { %529 = vmatprep.subr.bf16.mxu0 %v967_v1  ;;  %655 = vmatprep.subr.bf16.mxu1 %v967_v1 }
  0x46   : > { %530 = vmatpush1.bf16.msra.mxu0 %v946_v35  ;;  %656 = vmatpush1.bf16.msra.mxu1 %v947_v36 }
  0x47   : > { %531 = vmatprep.subr.bf16.mxu0 %v967_v1  ;;  %657 = vmatprep.subr.bf16.mxu1 %v967_v1 }
  0x4a   : > { %532 = vmatpush1.bf16.msra.mxu0 %v948_v37  ;;  %658 = vmatpush1.bf16.msra.mxu1 %v949_v38 }
  0x4b   : > { %533 = vmatprep.subr.bf16.mxu0 %v967_v1  ;;  %659 = vmatprep.subr.bf16.mxu1 %v967_v1 }
  0x4e   : > { %534 = vmatpush1.bf16.msra.mxu0 %v953_v39  ;;  %660 = vmatpush1.bf16.msra.mxu1 %v954_v40 }
  0x4f   : > { %535 = vmatprep.subr.bf16.mxu0 %v967_v1  ;;  %661 = vmatprep.subr.bf16.mxu1 %v967_v1 }
  0x52   : > { %536 = vmatpush1.bf16.msra.mxu0 %v955_v41  ;;  %662 = vmatpush1.bf16.msra.mxu1 %v956_v42 }
  0x53   : > { %537 = vmatprep.subr.bf16.mxu0 %v967_v1  ;;  %663 = vmatprep.subr.bf16.mxu1 %v967_v1 }
  0x56   : > { %538 = vmatpush1.bf16.msra.mxu0 %v957_v43  ;;  %664 = vmatpush1.bf16.msra.mxu1 %v958_v44 }
  0x59   : > { %554 = vmatmul.mubr.bf16.vlgmr.msra.gmra.mrb[8].mxu0 %v1066_v24  ;;  %680 = vmatmul.mubr.bf16.vlgmr.msra.gmra.mrb[8].mxu1 %v1066_v24 }
  0x5a   : > { %872 = vmatprep.mubr.msk.bf16.mxu0 %vm266_vm0, %v1075_v27  ;;  %901 = vmatprep.mubr.msk.bf16.mxu1 %vm266_vm0, %v1075_v27 }
  0x61   : > { %562 = vmatmul.mubr.bf16.gmra.mrb[12].mxu0 %v952_v30  ;;  %688 = vmatmul.mubr.bf16.gmra.mrb[12].mxu1 %v952_v30 }
  0x88   : > { %v707_v1 = vpop.permute.xlu0 %706  ;;  %v717_v18 = vpop.permute.xlu1 %716 }
  0x8c   : > { %v712_v13 = vpop.permute.xlu0 %711  ;;  %v722_v33 = vpop.permute.xlu1 %721 }
 0x108   : > { %v307_v45 = vpop.f32.mrb[0].mxu0  ;;  %v429_v46 = vpop.f32.mrb[0].mxu1 }
 0x109   : > { %v309_v47 = vpop.f32.mrb[1].mxu0  ;;  %v444_v48 = vmax.f32 %v307_v45, %v429_v46  ;;  %v431_v49 = vpop.f32.mrb[1].mxu1 }
 0x10a   : > { %v310_v50 = vpop.f32.mrb[2].mxu0  ;;  %v432_v51 = vpop.f32.mrb[2].mxu1 }
 0x10b   : > { %v312_v52 = vpop.f32.mrb[3].mxu0  ;;  %v445_v53 = vmax.f32 %v310_v50, %v432_v51  ;;  %v434_v54 = vpop.f32.mrb[3].mxu1 }
 0x110   : > { %v315_v55 = vpop.f32.mrb[4].mxu0  ;;  %v437_v57 = vpop.f32.mrb[4].mxu1 }
 0x111   : > { %v317_v56 = vpop.f32.mrb[5].mxu0  ;;  %v446_v58 = vmax.f32 %v315_v55, %v437_v57  ;;  %v439_v60 = vpop.f32.mrb[5].mxu1 }
 0x112   : > { %v318_v59 = vpop.f32.mrb[6].mxu0  ;;  %v440_v62 = vpop.f32.mrb[6].mxu1 }
 0x113   : > { %v320_v61 = vpop.f32.mrb[7].mxu0  ;;  %v447_v63 = vmax.f32 %v318_v59, %v440_v62  ;;  %v442_v0 = vpop.f32.mrb[7].mxu1 }
 0x12c   : > { %v555_v2 = vpop.f32.mrb[8].mxu0  ;;  %v681_v4 = vpop.f32.mrb[8].mxu1 }
 0x12d   : > { %v570_v3 = vmax.f32 %v444_v48, %v555_v2  ;;  %v557_v5 = vpop.f32.mrb[9].mxu0  ;;  %v683_v6 = vpop.f32.mrb[9].mxu1 }
 0x12e   : > { %v558_v7 = vpop.f32.mrb[10].mxu0  ;;  %v684_v10 = vpop.f32.mrb[10].mxu1 }
 0x12f   : > { %v696_v8 = vmax.f32 %v570_v3, %v681_v4  ;;  %v571_v9 = vmax.f32 %v445_v53, %v558_v7  ;;  %v560_v11 = vpop.f32.mrb[11].mxu0  ;;  %v686_v12 = vpop.f32.mrb[11].mxu1 }
 0x131   : > { %v724_v14 = vadd.f32 %v707_v1, %v696_v8  ;;  %v697_v15 = vmax.f32 %v571_v9, %v684_v10 }
 0x133   : > { %v728_v16 = vmax.f32 %v724_v14, 0.0  ;;  %v725_v17 = vadd.f32 %v712_v13, %v697_v15 }
 0x134   : > { %v563_v19 = vpop.f32.mrb[12].mxu0  ;;  %v689_v22 = vpop.f32.mrb[12].mxu1 }
 0x135   : > { %733 = vst.msk [vmem:[%s170_s10] sm:$0xff] %vm732_vm1, %v728_v16  ;;  %v729_v20 = vmax.f32 %v725_v17, 0.0  ;;  %v572_v21 = vmax.f32 %v446_v58, %v563_v19  ;;  %v565_v23 = vpop.f32.mrb[13].mxu0  ;;  %v691_v24 = vpop.f32.mrb[13].mxu1 }
 0x136   : > { %v566_v25 = vpop.f32.mrb[14].mxu0  ;;  %v692_v28 = vpop.f32.mrb[14].mxu1 }
 0x137   : > { %734 = vst.msk [vmem:[%s170_s10 + $0x8] sm:$0xff] %vm732_vm1, %v729_v20  ;;  %v698_v26 = vmax.f32 %v572_v21, %v689_v22  ;;  %v573_v27 = vmax.f32 %v447_v63, %v566_v25  ;;  %v568_v29 = vpop.f32.mrb[15].mxu0  ;;  %v694_v30 = vpop.f32.mrb[15].mxu1 }
 0x139   : > { %v726_v31 = vadd.f32 %v717_v18, %v698_v26  ;;  %v699_v32 = vmax.f32 %v573_v27, %v692_v28 }
 0x13b   : > { %v730_v34 = vmax.f32 %v726_v31, 0.0  ;;  %v727_v35 = vadd.f32 %v722_v33, %v699_v32 }
 0x13d   : > { %735 = vst.msk [vmem:[%s170_s10 + $0x10] sm:$0xff] %vm732_vm1, %v730_v34  ;;  %v731_v36 = vmax.f32 %v727_v35, 0.0 }
 0x13f   : > { %736 = vst.msk [vmem:[%s170_s10 + $0x18] sm:$0xff] %vm732_vm1, %v731_v36 }
 0x140 PF: > { %s13_s12 = sadd.s32 1, %s965_s12  }
 0x141   : > { %p10_p4 = scmp.ge.s32.totalorder %s13_s12, 4  }
 0x143   :  { %12 = sbr.rel (!%p10_p4) target bundleno = 1 (0x1), region = 65 }

// kernel: cnn_forward.5
= control target key start
LH: loop header
LB: loop body
LE: loop exit
PB: predicated region body
PF: predicated region fallthrough
CT: control target
= control target key end

     0   :  { %12 = vsyncpa [#allocation3], 0  ;;  %v37_v28 = vlaneseq  ;;  %v2191_v36 = vmov 1983009808   ;;  %s2720_s0 = inlined_call_operand.vmem [shape: f32[2,2048], index: 0, kind: input, shape index: {}]   ;;  %s2721_s1 = inlined_call_operand.vmem [shape: bf16[2048,128], index: 1, kind: input, shape index: {}]   ;;  %s2722_s2 = inlined_call_operand.vmem [shape: f32[1,128], index: 2, kind: input, shape index: {}]   ;;  %s2723_s3 = inlined_call_operand.vmem [shape: f32[128,35], index: 3, kind: input, shape index: {}]   ;;  %s2724_s4 = inlined_call_operand.vmem [shape: f32[1,35], index: 4, kind: input, shape index: {}]   ;;  %s2725_s5 = inlined_call_operand.hbm [shape: f32[2,35], index: 5, kind: output, shape index: {0}]   ;;  %s2726_s6 = inlined_call_operand.hbm [shape: f32[2,35], index: 6, kind: output, shape index: {1}]  }
   0x1   :  { %v2007_v0 = vld [vmem:[%s2721_s1 + $0x40] sm:$0xff]   ;;  %v2011_v4 = vld [vmem:[%s2721_s1 + $0x48] sm:$0xff]   ;;  %v2015_v8 = vld [vmem:[%s2721_s1 + $0x50] sm:$0xff]   ;;  %v35_v37 = vunpack.c.l.s4 %v2191_v36 }
   0x2   :  { %v2008_v1 = vld [vmem:[%s2721_s1 + $0xc0] sm:$0xff]   ;;  %1749 = vmatprep.subr.bf16.mxu0 %v2007_v0  ;;  %v2012_v5 = vld [vmem:[%s2721_s1 + $0xc8] sm:$0xff]   ;;  %v2016_v9 = vld [vmem:[%s2721_s1 + $0xd0] sm:$0xff]   ;;  %v38_v33 = vshrl.u32 %v37_v28, 7 }
   0x3   :  { %v2009_v2 = vld [vmem:[%s2721_s1] sm:$0xff]   ;;  %1771 = vmatprep.subr.bf16.mxu1 %v2008_v1  ;;  %v2013_v6 = vld [vmem:[%s2721_s1 + $0x8] sm:$0xff]   ;;  %v2017_v10 = vld [vmem:[%s2721_s1 + $0x10] sm:$0xff]   ;;  %v36_v39 = vunpack.c.0.s8 %v35_v37 }
   0x4   :  { %v2010_v3 = vld [vmem:[%s2721_s1 + $0x80] sm:$0xff]   ;;  %1750 = vmatpush3.bf16.msra.mxu0 %v2009_v2  ;;  %v2014_v7 = vld [vmem:[%s2721_s1 + $0x88] sm:$0xff]   ;;  %v2018_v11 = vld [vmem:[%s2721_s1 + $0x90] sm:$0xff]  }
   0x5   :  { %1772 = vmatpush3.bf16.msra.mxu1 %v2010_v3  ;;  %1751 = vmatprep.subr.bf16.mxu0 %v2011_v4  ;;  %v2019_v12 = vld [vmem:[%s2721_s1 + $0x58] sm:$0xff]   ;;  %v2023_v16 = vld [vmem:[%s2721_s1 + $0x60] sm:$0xff]   ;;  %v2027_v20 = vld [vmem:[%s2721_s1 + $0x68] sm:$0xff]   ;;  %v2337_v41 = vsub.s32 %v36_v39, %v38_v33 }
   0x6   :  { %1773 = vmatprep.subr.bf16.mxu1 %v2012_v5  ;;  %v2020_v13 = vld [vmem:[%s2721_s1 + $0xd8] sm:$0xff]   ;;  %v2024_v17 = vld [vmem:[%s2721_s1 + $0xe0] sm:$0xff]   ;;  %v2028_v21 = vld [vmem:[%s2721_s1 + $0xe8] sm:$0xff]  }
   0x7   :  { %v2021_v14 = vld [vmem:[%s2721_s1 + $0x18] sm:$0xff]   ;;  %v2025_v18 = vld [vmem:[%s2721_s1 + $0x20] sm:$0xff]   ;;  %v2029_v22 = vld [vmem:[%s2721_s1 + $0x28] sm:$0xff]  }
   0x8   :  { %1752 = vmatpush3.bf16.msra.mxu0 %v2013_v6  ;;  %v2022_v15 = vld [vmem:[%s2721_s1 + $0x98] sm:$0xff]   ;;  %v2026_v19 = vld [vmem:[%s2721_s1 + $0xa0] sm:$0xff]   ;;  %v2030_v23 = vld [vmem:[%s2721_s1 + $0xa8] sm:$0xff]  }
   0x9   :  { %1774 = vmatpush3.bf16.msra.mxu1 %v2014_v7  ;;  %1753 = vmatprep.subr.bf16.mxu0 %v2015_v8  ;;  %v2031_v24 = vld [vmem:[%s2721_s1 + $0x70] sm:$0xff]   ;;  %v2035_v29 = vld [vmem:[%s2721_s1 + $0x78] sm:$0xff]   ;;  %v25_v34 = vld [vmem:[%s2720_s0] sm:$0xff] }
   0xa   :  { %1775 = vmatprep.subr.bf16.mxu1 %v2016_v9  ;;  %v2032_v25 = vld [vmem:[%s2721_s1 + $0xf0] sm:$0xff]   ;;  %v2036_v30 = vld [vmem:[%s2721_s1 + $0xf8] sm:$0xff]   ;;  %v2040_v35 = vld [vmem:[%s2721_s1 + $0x140] sm:$0xff]   ;;  %v33_v40 = vcombine.high %v25_v34, %v25_v34  ;;  %v40_v42 = vrot.slane %v25_v34, %v2337_v41 }
   0xb   :  { %v2033_v26 = vld [vmem:[%s2721_s1 + $0x30] sm:$0xff]   ;;  %v2037_v31 = vld [vmem:[%s2721_s1 + $0x38] sm:$0xff]   ;;  %v2041_v38 = vld [vmem:[%s2721_s1 + $0x1c0] sm:$0xff]  }
   0xc   :  { %1754 = vmatpush3.bf16.msra.mxu0 %v2017_v10  ;;  %v2034_v27 = vld [vmem:[%s2721_s1 + $0xb0] sm:$0xff]   ;;  %v2038_v32 = vld [vmem:[%s2721_s1 + $0xb8] sm:$0xff]   ;;  %v47_v43 = vrot.slane %v33_v40, %v2337_v41  ;;  %v48_v44 = vcombine.high %v40_v42, %v40_v42  ;;  %v2042_v46 = vld [vmem:[%s2721_s1 + $0x100] sm:$0xff]   ;;  %v117_v47 = vpack.c.bf16 %v40_v42, %v40_v42 }
   0xd   :  { %1776 = vmatpush3.bf16.msra.mxu1 %v2018_v11  ;;  %1755 = vmatprep.subr.bf16.mxu0 %v2019_v12  ;;  %v2043_v49 = vld [vmem:[%s2721_s1 + $0x180] sm:$0xff]   ;;  %v2044_v52 = vld [vmem:[%s2721_s1 + $0x148] sm:$0xff]   ;;  %v2048_v56 = vld [vmem:[%s2721_s1 + $0x150] sm:$0xff]  }
   0xe   :  { %1777 = vmatprep.subr.bf16.mxu1 %v2020_v13  ;;  %v49_v45 = vcombine.high %v47_v43, %v47_v43  ;;  %v119_v48 = vpack.c.bf16 %v47_v43, %v47_v43  ;;  %v118_v50 = vpack.c.bf16 %v48_v44, %v48_v44  ;;  %v2045_v53 = vld [vmem:[%s2721_s1 + $0x1c8] sm:$0xff]   ;;  %v2049_v57 = vld [vmem:[%s2721_s1 + $0x1d0] sm:$0xff]   ;;  %v2052_v60 = vld [vmem:[%s2721_s1 + $0x158] sm:$0xff]  }
   0xf   :  { %v2046_v54 = vld [vmem:[%s2721_s1 + $0x108] sm:$0xff]   ;;  %v2050_v58 = vld [vmem:[%s2721_s1 + $0x110] sm:$0xff]   ;;  %v2053_v61 = vld [vmem:[%s2721_s1 + $0x1d8] sm:$0xff]  }
  0x10   :  { %1756 = vmatpush3.bf16.msra.mxu0 %v2021_v14  ;;  %v120_v51 = vpack.c.bf16 %v49_v45, %v49_v45  ;;  %1196 = vmatprep.mubr.bf16.mxu0 %v118_v50  ;;  %v2047_v55 = vld [vmem:[%s2721_s1 + $0x188] sm:$0xff]   ;;  %v2051_v59 = vld [vmem:[%s2721_s1 + $0x190] sm:$0xff]   ;;  %v2054_v62 = vld [vmem:[%s2721_s1 + $0x118] sm:$0xff]  }
  0x11   :  { %1778 = vmatpush3.bf16.msra.mxu1 %v2022_v15  ;;  %1757 = vmatprep.subr.bf16.mxu0 %v2023_v16  ;;  %v2055_v63 = vld [vmem:[%s2721_s1 + $0x198] sm:$0xff]   ;;  %v2056_v0 = vld [vmem:[%s2721_s1 + $0x160] sm:$0xff]   ;;  %v2060_v4 = vld [vmem:[%s2721_s1 + $0x168] sm:$0xff]  }
  0x12   :  { %1779 = vmatprep.subr.bf16.mxu1 %v2024_v17  ;;  %1236 = vmatprep.mubr.bf16.mxu1 %v120_v51  ;;  %v2057_v1 = vld [vmem:[%s2721_s1 + $0x1e0] sm:$0xff]   ;;  %v2061_v5 = vld [vmem:[%s2721_s1 + $0x1e8] sm:$0xff]   ;;  %v2064_v8 = vld [vmem:[%s2721_s1 + $0x170] sm:$0xff]  }
  0x13   :  { %v2058_v2 = vld [vmem:[%s2721_s1 + $0x120] sm:$0xff]   ;;  %v2062_v6 = vld [vmem:[%s2721_s1 + $0x128] sm:$0xff]   ;;  %v2065_v9 = vld [vmem:[%s2721_s1 + $0x1f0] sm:$0xff]  }
  0x14   :  { %1758 = vmatpush3.bf16.msra.mxu0 %v2025_v18  ;;  %v2059_v3 = vld [vmem:[%s2721_s1 + $0x1a0] sm:$0xff]   ;;  %v2063_v7 = vld [vmem:[%s2721_s1 + $0x1a8] sm:$0xff]   ;;  %v2066_v11 = vld [vmem:[%s2721_s1 + $0x130] sm:$0xff]  }
  0x15   :  { %1780 = vmatpush3.bf16.msra.mxu1 %v2026_v19  ;;  %1759 = vmatprep.subr.bf16.mxu0 %v2027_v20  ;;  %v26_v10 = vld [vmem:[%s2720_s0 + $0x8] sm:$0xff]  ;;  %v2067_v14 = vld [vmem:[%s2721_s1 + $0x1b0] sm:$0xff]   ;;  %v2068_v15 = vld [vmem:[%s2721_s1 + $0x178] sm:$0xff]  }
  0x16   :  { %1781 = vmatprep.subr.bf16.mxu1 %v2028_v21  ;;  %v57_v12 = vrot.slane %v26_v10, %v2337_v41  ;;  %v50_v13 = vcombine.high %v26_v10, %v26_v10  ;;  %v2069_v18 = vld [vmem:[%s2721_s1 + $0x1f8] sm:$0xff]   ;;  %v2080_v33 = vld [vmem:[%s2721_s1 + $0x288] sm:$0xff]   ;;  %v2081_v34 = vld [vmem:[%s2721_s1 + $0x250] sm:$0xff]  }
  0x17   :  { %v2070_v19 = vld [vmem:[%s2721_s1 + $0x138] sm:$0xff]   ;;  %v2083_v36 = vld [vmem:[%s2721_s1 + $0x210] sm:$0xff]   ;;  %v2089_v43 = vld [vmem:[%s2721_s1 + $0x260] sm:$0xff]  }
  0x18   :  { %1760 = vmatpush3.bf16.msra.mxu0 %v2029_v22  ;;  %v65_v16 = vcombine.high %v57_v12, %v57_v12  ;;  %v64_v17 = vrot.slane %v50_v13, %v2337_v41  ;;  %v2071_v22 = vld [vmem:[%s2721_s1 + $0x1b8] sm:$0xff]   ;;  %v2084_v37 = vld [vmem:[%s2721_s1 + $0x290] sm:$0xff]   ;;  %v2090_v44 = vld [vmem:[%s2721_s1 + $0x2e0] sm:$0xff]  }
  0x19   :  { %1782 = vmatpush3.bf16.msra.mxu1 %v2030_v23  ;;  %1761 = vmatprep.subr.bf16.mxu0 %v2031_v24  ;;  %v2073_v24 = vld [vmem:[%s2721_s1 + $0x240] sm:$0xff]   ;;  %v2086_v39 = vld [vmem:[%s2721_s1 + $0x2d8] sm:$0xff]   ;;  %v2096_v50 = vld [vmem:[%s2721_s1 + $0x2a8] sm:$0xff]  }
  0x1a   :  { %1783 = vmatprep.subr.bf16.mxu1 %v2032_v25  ;;  %v122_v20 = vpack.c.bf16 %v65_v16, %v65_v16  ;;  %v66_v21 = vcombine.high %v64_v17, %v64_v17  ;;  %v2074_v25 = vld [vmem:[%s2721_s1 + $0x2c0] sm:$0xff]   ;;  %v123_v28 = vpack.c.bf16 %v64_v17, %v64_v17  ;;  %v2087_v40 = vld [vmem:[%s2721_s1 + $0x218] sm:$0xff]   ;;  %v2097_v51 = vld [vmem:[%s2721_s1 + $0x270] sm:$0xff]  }
  0x1b   :  { %v2088_v42 = vld [vmem:[%s2721_s1 + $0x298] sm:$0xff]   ;;  %v2091_v45 = vld [vmem:[%s2721_s1 + $0x220] sm:$0xff]   ;;  %v2111_v10 = vld [vmem:[%s2721_s1 + $0x3c8] sm:$0xff]  }
  0x1c   :  { %1762 = vmatpush3.bf16.msra.mxu0 %v2033_v26  ;;  %v124_v23 = vpack.c.bf16 %v66_v21, %v66_v21  ;;  %v2075_v26 = vld [vmem:[%s2721_s1 + $0x200] sm:$0xff]   ;;  %v2114_v13 = vld [vmem:[%s2721_s1 + $0x350] sm:$0xff]   ;;  %v2118_v17 = vld [vmem:[%s2721_s1 + $0x358] sm:$0xff]  }
  0x1d   :  { %1784 = vmatpush3.bf16.msra.mxu1 %v2034_v27  ;;  %1763 = vmatprep.subr.bf16.mxu0 %v2035_v29  ;;  %v121_v27 = vpack.c.bf16 %v57_v12, %v57_v12  ;;  %v2076_v29 = vld [vmem:[%s2721_s1 + $0x280] sm:$0xff]   ;;  %v2113_v12 = vld [vmem:[%s2721_s1 + $0x388] sm:$0xff]   ;;  %v2117_v16 = vld [vmem:[%s2721_s1 + $0x390] sm:$0xff]  }
  0x1e   :  { %1785 = vmatprep.subr.bf16.mxu1 %v2036_v30  ;;  %v2077_v30 = vld [vmem:[%s2721_s1 + $0x248] sm:$0xff]   ;;  %v2122_v21 = vld [vmem:[%s2721_s1 + $0x360] sm:$0xff]  }
  0x20   :  { %1764 = vmatpush3.bf16.msra.mxu0 %v2037_v31  ;;  %v2078_v31 = vld [vmem:[%s2721_s1 + $0x2c8] sm:$0xff]  }
  0x21   :  { %1786 = vmatpush3.bf16.msra.mxu1 %v2038_v32  ;;  %1793 = vmatprep.subr.bf16.mxu0 %v2040_v35  ;;  %v2079_v32 = vld [vmem:[%s2721_s1 + $0x208] sm:$0xff]   ;;  %v2082_v35 = vld [vmem:[%s2721_s1 + $0x2d0] sm:$0xff]  }
  0x22   :  { %1815 = vmatprep.subr.bf16.mxu1 %v2041_v38  ;;  %v2085_v38 = vld [vmem:[%s2721_s1 + $0x258] sm:$0xff]  }
  0x23   :  { %1197 = vmatmul.mubr.bf16.vlgmr.msra.gmra.mrb[0].mxu0 %v117_v47  ;;  %v2093_v47 = vld [vmem:[%s2721_s1 + $0x268] sm:$0xff]  }
  0x24   :  { %1237 = vmatmul.mubr.bf16.vlgmr.msra.gmra.mrb[0].mxu1 %v119_v48  ;;  %1794 = vmatpush3.bf16.msra.mxu0 %v2042_v46  ;;  %v2092_v46 = vld [vmem:[%s2721_s1 + $0x2a0] sm:$0xff]   ;;  %v2094_v48 = vld [vmem:[%s2721_s1 + $0x2e8] sm:$0xff]  }
  0x25   :  { %1816 = vmatpush3.bf16.msra.mxu1 %v2043_v49  ;;  %1795 = vmatprep.subr.bf16.mxu0 %v2044_v52  ;;  %v2095_v49 = vld [vmem:[%s2721_s1 + $0x228] sm:$0xff]   ;;  %v2098_v52 = vld [vmem:[%s2721_s1 + $0x2f0] sm:$0xff]  }
  0x26   :  { %1817 = vmatprep.subr.bf16.mxu1 %v2045_v53  ;;  %1276 = vmatprep.mubr.bf16.mxu0 %v122_v20  ;;  %v27_v53 = vld [vmem:[%s2720_s0 + $0x10] sm:$0xff]  ;;  %v2121_v20 = vld [vmem:[%s2721_s1 + $0x398] sm:$0xff]  }
  0x27   :  { %1316 = vmatprep.mubr.bf16.mxu1 %v124_v23  ;;  %v2124_v23 = vld [vmem:[%s2721_s1 + $0x320] sm:$0xff]  }
  0x28   :  { %1796 = vmatpush3.bf16.msra.mxu0 %v2046_v54  ;;  %v2099_v54 = vld [vmem:[%s2721_s1 + $0x230] sm:$0xff]  }
  0x29   :  { %1818 = vmatpush3.bf16.msra.mxu1 %v2047_v55  ;;  %1797 = vmatprep.subr.bf16.mxu0 %v2048_v56  ;;  %v74_v55 = vrot.slane %v27_v53, %v2337_v41  ;;  %v67_v56 = vcombine.high %v27_v53, %v27_v53 }
  0x2a   :  { %1819 = vmatprep.subr.bf16.mxu1 %v2049_v57  ;;  %v2100_v57 = vld [vmem:[%s2721_s1 + $0x2b0] sm:$0xff]  }
  0x2c   :  { %1798 = vmatpush3.bf16.msra.mxu0 %v2050_v58  ;;  %v2101_v58 = vld [vmem:[%s2721_s1 + $0x278] sm:$0xff]  }
  0x2d   :  { %1820 = vmatpush3.bf16.msra.mxu1 %v2051_v59  ;;  %1799 = vmatprep.subr.bf16.mxu0 %v2052_v60  ;;  %v82_v59 = vcombine.high %v74_v55, %v74_v55  ;;  %v81_v60 = vrot.slane %v67_v56, %v2337_v41 }
  0x2e   :  { %1821 = vmatprep.subr.bf16.mxu1 %v2053_v61  ;;  %v2102_v61 = vld [vmem:[%s2721_s1 + $0x2f8] sm:$0xff]  }
  0x30   :  { %1800 = vmatpush3.bf16.msra.mxu0 %v2054_v62  ;;  %v2103_v62 = vld [vmem:[%s2721_s1 + $0x238] sm:$0xff]  }
  0x31   :  { %1822 = vmatpush3.bf16.msra.mxu1 %v2055_v63  ;;  %1801 = vmatprep.subr.bf16.mxu0 %v2056_v0  ;;  %v126_v63 = vpack.c.bf16 %v82_v59, %v82_v59  ;;  %v83_v0 = vcombine.high %v81_v60, %v81_v60 }
  0x32   :  { %1823 = vmatprep.subr.bf16.mxu1 %v2057_v1  ;;  %v2104_v1 = vld [vmem:[%s2721_s1 + $0x2b8] sm:$0xff]  }
  0x34   :  { %1802 = vmatpush3.bf16.msra.mxu0 %v2058_v2  ;;  %v128_v2 = vpack.c.bf16 %v83_v0, %v83_v0 }
  0x35   :  { %1824 = vmatpush3.bf16.msra.mxu1 %v2059_v3  ;;  %1803 = vmatprep.subr.bf16.mxu0 %v2060_v4  ;;  %v2106_v3 = vld [vmem:[%s2721_s1 + $0x340] sm:$0xff]  }
  0x36   :  { %1825 = vmatprep.subr.bf16.mxu1 %v2061_v5  ;;  %v2107_v4 = vld [vmem:[%s2721_s1 + $0x3c0] sm:$0xff]  }
  0x37   :  { %v2108_v5 = vld [vmem:[%s2721_s1 + $0x300] sm:$0xff]  }
  0x38   :  { %1804 = vmatpush3.bf16.msra.mxu0 %v2062_v6  ;;  %v125_v6 = vpack.c.bf16 %v74_v55, %v74_v55 }
  0x39   :  { %1826 = vmatpush3.bf16.msra.mxu1 %v2063_v7  ;;  %1805 = vmatprep.subr.bf16.mxu0 %v2064_v8  ;;  %v127_v7 = vpack.c.bf16 %v81_v60, %v81_v60  ;;  %v2109_v8 = vld [vmem:[%s2721_s1 + $0x380] sm:$0xff]  }
  0x3a   :  { %1827 = vmatprep.subr.bf16.mxu1 %v2065_v9  ;;  %v2110_v9 = vld [vmem:[%s2721_s1 + $0x348] sm:$0xff]  }
  0x3c   :  { %1806 = vmatpush3.bf16.msra.mxu0 %v2066_v11  ;;  %v2112_v11 = vld [vmem:[%s2721_s1 + $0x308] sm:$0xff]  }
  0x3d   :  { %1828 = vmatpush3.bf16.msra.mxu1 %v2067_v14  ;;  %1807 = vmatprep.subr.bf16.mxu0 %v2068_v15  ;;  %v2115_v14 = vld [vmem:[%s2721_s1 + $0x3d0] sm:$0xff]  }
  0x3e   :  { %1829 = vmatprep.subr.bf16.mxu1 %v2069_v18  ;;  %v2116_v15 = vld [vmem:[%s2721_s1 + $0x310] sm:$0xff]   ;;  %v2119_v18 = vld [vmem:[%s2721_s1 + $0x3d8] sm:$0xff]  }
  0x40   :  { %1808 = vmatpush3.bf16.msra.mxu0 %v2070_v19  ;;  %v2120_v19 = vld [vmem:[%s2721_s1 + $0x318] sm:$0xff]  }
  0x41   :  { %1830 = vmatpush3.bf16.msra.mxu1 %v2071_v22  ;;  %1837 = vmatprep.subr.bf16.mxu0 %v2073_v24  ;;  %v2123_v22 = vld [vmem:[%s2721_s1 + $0x3e0] sm:$0xff]  }
  0x42   :  { %1859 = vmatprep.subr.bf16.mxu1 %v2074_v25  ;;  %v2125_v24 = vld [vmem:[%s2721_s1 + $0x3a0] sm:$0xff]   ;;  %v2126_v25 = vld [vmem:[%s2721_s1 + $0x368] sm:$0xff]  }
  0x43   :  { %1277 = vmatmul.mubr.bf16.vlgmr.msra.gmra.mrb[4].mxu0 %v121_v27  ;;  %v2128_v27 = vld [vmem:[%s2721_s1 + $0x328] sm:$0xff]  }
  0x44   :  { %1317 = vmatmul.mubr.bf16.vlgmr.msra.gmra.mrb[4].mxu1 %v123_v28  ;;  %1838 = vmatpush3.bf16.msra.mxu0 %v2075_v26  ;;  %v2127_v26 = vld [vmem:[%s2721_s1 + $0x3e8] sm:$0xff]  }
  0x45   :  { %1860 = vmatpush3.bf16.msra.mxu1 %v2076_v29  ;;  %1839 = vmatprep.subr.bf16.mxu0 %v2077_v30  ;;  %v2129_v28 = vld [vmem:[%s2721_s1 + $0x3a8] sm:$0xff]   ;;  %v2130_v29 = vld [vmem:[%s2721_s1 + $0x370] sm:$0xff]  }
  0x46   :  { %1861 = vmatprep.subr.bf16.mxu1 %v2078_v31  ;;  %1356 = vmatprep.mubr.bf16.mxu0 %v126_v63  ;;  %v2131_v30 = vld [vmem:[%s2721_s1 + $0x3f0] sm:$0xff]   ;;  %v28_v31 = vld [vmem:[%s2720_s0 + $0x18] sm:$0xff] }
  0x47   :  { %1396 = vmatprep.mubr.bf16.mxu1 %v128_v2 }
  0x48   :  { %1840 = vmatpush3.bf16.msra.mxu0 %v2079_v32 }
  0x49   :  { %1862 = vmatpush3.bf16.msra.mxu1 %v2080_v33  ;;  %1841 = vmatprep.subr.bf16.mxu0 %v2081_v34 }
  0x4a   :  { %1863 = vmatprep.subr.bf16.mxu1 %v2082_v35 }
  0x4c   :  { %1842 = vmatpush3.bf16.msra.mxu0 %v2083_v36 }
  0x4d   :  { %1864 = vmatpush3.bf16.msra.mxu1 %v2084_v37  ;;  %1843 = vmatprep.subr.bf16.mxu0 %v2085_v38 }
  0x4e   :  { %1865 = vmatprep.subr.bf16.mxu1 %v2086_v39 }
  0x50   :  { %1844 = vmatpush3.bf16.msra.mxu0 %v2087_v40 }
  0x51   :  { %1866 = vmatpush3.bf16.msra.mxu1 %v2088_v42  ;;  %1845 = vmatprep.subr.bf16.mxu0 %v2089_v43 }
  0x52   :  { %1867 = vmatprep.subr.bf16.mxu1 %v2090_v44 }
  0x54   :  { %1846 = vmatpush3.bf16.msra.mxu0 %v2091_v45 }
  0x55   :  { %1868 = vmatpush3.bf16.msra.mxu1 %v2092_v46  ;;  %1847 = vmatprep.subr.bf16.mxu0 %v2093_v47 }
  0x56   :  { %1869 = vmatprep.subr.bf16.mxu1 %v2094_v48 }
  0x58   :  { %1848 = vmatpush3.bf16.msra.mxu0 %v2095_v49 }
  0x59   :  { %1870 = vmatpush3.bf16.msra.mxu1 %v2096_v50  ;;  %1849 = vmatprep.subr.bf16.mxu0 %v2097_v51 }
  0x5a   :  { %1871 = vmatprep.subr.bf16.mxu1 %v2098_v52 }
  0x5c   :  { %1850 = vmatpush3.bf16.msra.mxu0 %v2099_v54 }
  0x5d   :  { %1872 = vmatpush3.bf16.msra.mxu1 %v2100_v57  ;;  %1851 = vmatprep.subr.bf16.mxu0 %v2101_v58 }
  0x5e   :  { %1873 = vmatprep.subr.bf16.mxu1 %v2102_v61 }
  0x60   :  { %1852 = vmatpush3.bf16.msra.mxu0 %v2103_v62 }
  0x61   :  { %1874 = vmatpush3.bf16.msra.mxu1 %v2104_v1  ;;  %1881 = vmatprep.subr.bf16.mxu0 %v2106_v3 }
  0x62   :  { %1903 = vmatprep.subr.bf16.mxu1 %v2107_v4 }
  0x63   :  { %1357 = vmatmul.mubr.bf16.vlgmr.msra.gmra.mrb[8].mxu0 %v125_v6 }
  0x64   :  { %1397 = vmatmul.mubr.bf16.vlgmr.msra.gmra.mrb[8].mxu1 %v127_v7  ;;  %1882 = vmatpush3.bf16.msra.mxu0 %v2108_v5 }
  0x65   :  { %1904 = vmatpush3.bf16.msra.mxu1 %v2109_v8  ;;  %1883 = vmatprep.subr.bf16.mxu0 %v2110_v9 }
  0x66   :  { %1905 = vmatprep.subr.bf16.mxu1 %v2111_v10 }
  0x68   :  { %1884 = vmatpush3.bf16.msra.mxu0 %v2112_v11 }
  0x69   :  { %1906 = vmatpush3.bf16.msra.mxu1 %v2113_v12  ;;  %1885 = vmatprep.subr.bf16.mxu0 %v2114_v13 }
  0x6a   :  { %1907 = vmatprep.subr.bf16.mxu1 %v2115_v14 }
  0x6c   :  { %1886 = vmatpush3.bf16.msra.mxu0 %v2116_v15 }
  0x6d   :  { %1908 = vmatpush3.bf16.msra.mxu1 %v2117_v16  ;;  %1887 = vmatprep.subr.bf16.mxu0 %v2118_v17 }
  0x6e   :  { %1909 = vmatprep.subr.bf16.mxu1 %v2119_v18 }
  0x70   :  { %1888 = vmatpush3.bf16.msra.mxu0 %v2120_v19 }
  0x71   :  { %1910 = vmatpush3.bf16.msra.mxu1 %v2121_v20  ;;  %1889 = vmatprep.subr.bf16.mxu0 %v2122_v21 }
  0x72   :  { %1911 = vmatprep.subr.bf16.mxu1 %v2123_v22 }
  0x74   :  { %1890 = vmatpush3.bf16.msra.mxu0 %v2124_v23 }
  0x75   :  { %1912 = vmatpush3.bf16.msra.mxu1 %v2125_v24  ;;  %1891 = vmatprep.subr.bf16.mxu0 %v2126_v25 }
  0x76   :  { %1913 = vmatprep.subr.bf16.mxu1 %v2127_v26 }
  0x77   :  { %13 = vsyncpa [#allocation5], 0  ;;  %v91_v32 = vrot.slane %v28_v31, %v2337_v41  ;;  %v84_v33 = vcombine.high %v28_v31, %v28_v31  ;;  %v2132_v34 = vld [vmem:[%s2721_s1 + $0x330] sm:$0xff]   ;;  %v2134_v36 = vld [vmem:[%s2721_s1 + $0x378] sm:$0xff]   ;;  %v2192_v50 = vmov 0.0|0.0   ;;  %vm2193_vm0 = vmmov 0  }
  0x78   :  { %1892 = vmatpush3.bf16.msra.mxu0 %v2128_v27  ;;  %v2133_v35 = vld [vmem:[%s2721_s1 + $0x3b0] sm:$0xff]   ;;  %v2135_v37 = vld [vmem:[%s2721_s1 + $0x3f8] sm:$0xff]   ;;  %v1485_v48 = vld [vmem:[%s2723_s3 + $0x8] sm:$0xff]  ;;  %v2194_v8 = vmov 0.0   ;;  %vm1577_vm1 = vcmask 279552   ;;  %s2195_s27 = smov [#allocation2]  }
  0x79   :  { %1914 = vmatpush3.bf16.msra.mxu1 %v2129_v28  ;;  %1893 = vmatprep.subr.bf16.mxu0 %v2130_v29  ;;  %v99_v38 = vcombine.high %v91_v32, %v91_v32  ;;  %v98_v39 = vrot.slane %v84_v33, %v2337_v41  ;;  %v2136_v43 = vld [vmem:[%s2721_s1 + $0x338] sm:$0xff]   ;;  %v129_v46 = vpack.c.bf16 %v91_v32, %v91_v32  ;;  %v1484_v41 = vld [vmem:[%s2723_s3] sm:$0xff]  ;;  %v1486_v49 = vld [vmem:[%s2723_s3 + $0x10] sm:$0xff]  ;;  %s1597_s28 = sshll.u32 %s2195_s27, 4  ;;  %s1598_s28 = int_to_ptr.vmem [resolvable:$true] %s1597_s28 }
  0x7a   :  { %1915 = vmatprep.subr.bf16.mxu1 %v2131_v30  ;;  %v2137_v44 = vld [vmem:[%s2721_s1 + $0x3b8] sm:$0xff]   ;;  %v1978_v51 = vpack.c.bf16 %v1485_v48, %v1484_v41  ;;  %v1488_v54 = vld [vmem:[%s2723_s3 + $0x20] sm:$0xff]  ;;  %v1489_v55 = vld [vmem:[%s2723_s3 + $0x28] sm:$0xff]  ;;  %p2148_p1 = scmp.lt.s32.totalorder %s1598_s28, %s1598_s28 }
  0x7b   :  { %v130_v40 = vpack.c.bf16 %v99_v38, %v99_v38  ;;  %v100_v42 = vcombine.high %v98_v39, %v98_v39  ;;  %v131_v47 = vpack.c.bf16 %v98_v39, %v98_v39  ;;  %v1487_v52 = vld [vmem:[%s2723_s3 + $0x18] sm:$0xff]  ;;  %v1984_v56 = vpack.c.bf16 %v1489_v55, %v1488_v54  ;;  %v1490_v57 = vld [vmem:[%s2723_s3 + $0x30] sm:$0xff]  ;;  %v1492_v60 = vld [vmem:[%s2723_s3 + $0x40] sm:$0xff] }
  0x7c   :  { %1894 = vmatpush3.bf16.msra.mxu0 %v2132_v34  ;;  %v1981_v53 = vpack.c.bf16 %v1487_v52, %v1486_v49  ;;  %v1491_v58 = vld [vmem:[%s2723_s3 + $0x38] sm:$0xff]  ;;  %v1493_v61 = vld [vmem:[%s2723_s3 + $0x48] sm:$0xff]  ;;  %v1494_v63 = vld [vmem:[%s2723_s3 + $0x50] sm:$0xff] }
  0x7d   :  { %1916 = vmatpush3.bf16.msra.mxu1 %v2133_v35  ;;  %1895 = vmatprep.subr.bf16.mxu0 %v2134_v36  ;;  %v132_v45 = vpack.c.bf16 %v100_v42, %v100_v42  ;;  %v1987_v59 = vpack.c.bf16 %v1491_v58, %v1490_v57  ;;  %v1990_v62 = vpack.c.bf16 %v1493_v61, %v1492_v60  ;;  %v1495_v0 = vld [vmem:[%s2723_s3 + $0x58] sm:$0xff]  ;;  %v1496_v2 = vld [vmem:[%s2723_s3 + $0x60] sm:$0xff]  ;;  %v1497_v3 = vld [vmem:[%s2723_s3 + $0x68] sm:$0xff] }
  0x7e   :  { %1917 = vmatprep.subr.bf16.mxu1 %v2135_v37  ;;  %1436 = vmatprep.mubr.bf16.mxu0 %v130_v40  ;;  %v1993_v1 = vpack.c.bf16 %v1495_v0, %v1494_v63  ;;  %v1996_v4 = vpack.c.bf16 %v1497_v3, %v1496_v2  ;;  %v1498_v5 = vld [vmem:[%s2723_s3 + $0x70] sm:$0xff]  ;;  %v1499_v6 = vld [vmem:[%s2723_s3 + $0x78] sm:$0xff]  ;;  %v1619_v11 = vld [vmem:[%s2722_s2] ss:$0 sm:$0xff] }
  0x7f   :  { %1476 = vmatprep.mubr.bf16.mxu1 %v132_v45  ;;  %v1999_v7 = vpack.c.bf16 %v1499_v6, %v1498_v5  ;;  %v1748_v58 = vld [vmem:[%s2724_s4] ss:$0 sm:$0xff]  ;;  %s2143_s4 = scalar_lea.vmem %s1598_s28, 32 }
  0x80   :  { %1896 = vmatpush3.bf16.msra.mxu0 %v2136_v43  ;;  %p2144_p0 = scmp.ne.s32.totalorder %s1598_s28, %s2143_s4  ;;  %p2149_p2 = scmp.lt.s32.totalorder %s2143_s4, %s2143_s4 }
  0x81   :  { %1918 = vmatpush3.bf16.msra.mxu1 %v2137_v44  ;;  %1977 = vmatprep.subr.bf16.mxu0 %v2192_v50 }
  0x82   :  { %p2150_p3 = por %p2149_p2, %p2148_p1 }
  0x83   :  { %1437 = vmatmul.mubr.bf16.vlgmr.msra.gmra.mrb[12].mxu0 %v129_v46 }
  0x84   :  { %1477 = vmatmul.mubr.bf16.vlgmr.msra.gmra.mrb[12].mxu1 %v131_v47  ;;  %1979 = vmatpush3.bf16.msra.mxu0 %v1978_v51  ;;  %p2151_p4 = pnand %p2150_p3, %p2144_p0 }
  0x85   :  { %1980 = vmatprep.subr.bf16.mxu0 %v2192_v50  ;;  %1974 = vmatprep.mubr.msk.f32.mxu0 %vm2193_vm0, %v2194_v8 }
  0x88   :  { %1982 = vmatpush3.bf16.msra.mxu0 %v1981_v53 }
  0x89   :  { %1983 = vmatprep.subr.bf16.mxu0 %v2192_v50 }
  0x8c   :  { %1985 = vmatpush3.bf16.msra.mxu0 %v1984_v56 }
  0x8d   :  { %1986 = vmatprep.subr.bf16.mxu0 %v2192_v50 }
  0x90   :  { %1988 = vmatpush3.bf16.msra.mxu0 %v1987_v59 }
  0x91   :  { %1989 = vmatprep.subr.bf16.mxu0 %v2192_v50 }
  0x94   :  { %1991 = vmatpush3.bf16.msra.mxu0 %v1990_v62 }
  0x95   :  { %1992 = vmatprep.subr.bf16.mxu0 %v2192_v50 }
  0x98   :  { %1994 = vmatpush3.bf16.msra.mxu0 %v1993_v1 }
  0x99   :  { %1995 = vmatprep.subr.bf16.mxu0 %v2192_v50 }
  0x9c   :  { %1997 = vmatpush3.bf16.msra.mxu0 %v1996_v4 }
  0x9d   :  { %1998 = vmatprep.subr.bf16.mxu0 %v2192_v50 }
  0xa0   :  { %2000 = vmatpush3.bf16.msra.mxu0 %v1999_v7 }
  0xf6   :  { %v1765_v9 = vpop.f32.mrb[0].mxu0 }
  0xf7   :  { %v1787_v10 = vpop.f32.mrb[0].mxu1  ;;  %v1766_v12 = vpop.f32.mrb[1].mxu0 }
  0xf8   :  { %v1788_v13 = vpop.f32.mrb[1].mxu1  ;;  %v1767_v14 = vadd.f32 %v1766_v12, %v1765_v9  ;;  %v1768_v16 = vpop.f32.mrb[2].mxu0 }
  0xf9   :  { %v1789_v15 = vadd.f32 %v1788_v13, %v1787_v10  ;;  %v1790_v17 = vpop.f32.mrb[2].mxu1  ;;  %v1769_v18 = vpop.f32.mrb[3].mxu0 }
  0xfa   :  { %v1791_v19 = vpop.f32.mrb[3].mxu1  ;;  %v1199_v20 = vadd.f32 %v1767_v14, %v1619_v11 }
  0xfc   :  { %v1239_v21 = vadd.f32 %v1789_v15, %v1199_v20 }
 0x116   :  { %v1809_v22 = vpop.f32.mrb[4].mxu0 }
 0x117   :  { %v1831_v23 = vpop.f32.mrb[4].mxu1  ;;  %v1810_v24 = vpop.f32.mrb[5].mxu0 }
 0x118   :  { %v1832_v25 = vpop.f32.mrb[5].mxu1  ;;  %v1811_v26 = vadd.f32 %v1810_v24, %v1809_v22  ;;  %v1812_v28 = vpop.f32.mrb[6].mxu0 }
 0x119   :  { %v1833_v27 = vadd.f32 %v1832_v25, %v1831_v23  ;;  %v1834_v29 = vpop.f32.mrb[6].mxu1  ;;  %v1813_v30 = vpop.f32.mrb[7].mxu0 }
 0x11a   :  { %v1835_v31 = vpop.f32.mrb[7].mxu1  ;;  %v1279_v32 = vadd.f32 %v1811_v26, %v1239_v21 }
 0x11c   :  { %v1319_v33 = vadd.f32 %v1833_v27, %v1279_v32 }
 0x136   :  { %v1853_v34 = vpop.f32.mrb[8].mxu0 }
 0x137   :  { %v1875_v35 = vpop.f32.mrb[8].mxu1  ;;  %v1854_v36 = vpop.f32.mrb[9].mxu0 }
 0x138   :  { %v1876_v37 = vpop.f32.mrb[9].mxu1  ;;  %v1855_v38 = vadd.f32 %v1854_v36, %v1853_v34  ;;  %v1856_v40 = vpop.f32.mrb[10].mxu0 }
 0x139   :  { %v1877_v39 = vadd.f32 %v1876_v37, %v1875_v35  ;;  %v1878_v42 = vpop.f32.mrb[10].mxu1  ;;  %v1857_v43 = vpop.f32.mrb[11].mxu0 }
 0x13a   :  { %v1879_v44 = vpop.f32.mrb[11].mxu1  ;;  %v1359_v45 = vadd.f32 %v1855_v38, %v1319_v33 }
 0x13c   :  { %v1399_v46 = vadd.f32 %v1877_v39, %v1359_v45 }
 0x156   :  { %v1897_v47 = vpop.f32.mrb[12].mxu0 }
 0x157   :  { %v1919_v41 = vpop.f32.mrb[12].mxu1  ;;  %v1898_v48 = vpop.f32.mrb[13].mxu0 }
 0x158   :  { %v1920_v49 = vpop.f32.mrb[13].mxu1  ;;  %v1899_v50 = vadd.f32 %v1898_v48, %v1897_v47  ;;  %v1900_v52 = vpop.f32.mrb[14].mxu0 }
 0x159   :  { %v1921_v51 = vadd.f32 %v1920_v49, %v1919_v41  ;;  %v1922_v53 = vpop.f32.mrb[14].mxu1  ;;  %v1901_v54 = vpop.f32.mrb[15].mxu0 }
 0x15a   :  { %v1923_v55 = vpop.f32.mrb[15].mxu1  ;;  %v1439_v56 = vadd.f32 %v1899_v50, %v1399_v46 }
 0x15c   :  { %v1479_v57 = vadd.f32 %v1921_v51, %v1439_v56 }
 0x15e   :  { %1975 = vmatmul.mubr.f32.vlgmr.msra.gmra.mrb[16].mxu0 %v1479_v57 }
 0x231   :  { %v1573_v59 = vpop.f32.mrb[16].mxu0 }
 0x232   :  { %v1574_v60 = vadd.f32 %v1748_v58, %v1573_v59  ;;  %v1976_v61 = vpop.f32.mrb[17].mxu0 }
 0x234   :  { %v1579_v62 = vsel %vm1577_vm1, %v1574_v60, -inf  ;;  %1578 = vst.msk [vmem:[#allocation2] sm:$0x3] %vm1577_vm1, %v1574_v60 }
 0x235   :  { %1580 = vmax.xlane.f32.xlu0 %v1579_v62 }
 0x2c2   :  { %v1581_v63 = vpop.xlane.xlu0 %1580 }
 0x2c3   :  { %v1582_v0 = vsub.f32 %v1574_v60, %v1581_v63 }
 0x2c5   :  { %v1583_v1 = vmul.f32 1.442695, %v1582_v0 }
 0x2c7   :  { %2139 = vpow2.f32 %v1583_v1 }
 0x2d1   :  { %v2140_v2 = vpop.eup %2139 }
 0x2d2   :  { %v1585_v3 = vsel %vm1577_vm1, %v2140_v2, 0.0 }
 0x2d3   :  { %1586 = vadd.xlane.f32.xlu0 %v1585_v3 }
 0x2d4   :  { %2154 = shalt.err (!%p2151_p4)
}
 0x2d5   :  { %s2155_s7 = scalar_lea.hbm %s2725_s5, 32 }
 0x2d6   :  { %p2156_p5 = scmp.ne.s32.totalorder %s2725_s5, %s2155_s7  ;;  %p2159_p6 = scmp.lt.u32.totalorder %s2155_s7, %s2725_s5 }
 0x2d8   :  { %p2161_p7 = pnand %p2159_p6, %p2156_p5 }
 0x2da   :  { %2164 = shalt.err (!%p2161_p7)
}
 0x2db   :  { %1600 = dma.vmem_to_hbm [thread:$0]  %s1598_s28, 32, %s2725_s5, [#allocation3]  }
 0x2dc   :  { %s2196_s14 = smov [#allocation4]  }
 0x2dd   :  { %s1607_s0 = sshll.u32 %s2196_s14, 4  ;;  %s1608_s0 = int_to_ptr.vmem [resolvable:$true] %s1607_s0 }
 0x2de   :  { %s2165_s15 = scalar_lea.vmem %s1608_s0, 32  ;;  %p2170_p9 = scmp.lt.s32.totalorder %s1608_s0, %s1608_s0 }
 0x2df   :  { %p2166_p8 = scmp.ne.s32.totalorder %s1608_s0, %s2165_s15  ;;  %p2171_p10 = scmp.lt.s32.totalorder %s2165_s15, %s2165_s15 }
 0x2e1   :  { %p2172_p11 = por %p2171_p10, %p2170_p9 }
 0x2e3   :  { %p2173_p12 = pnand %p2172_p11, %p2166_p8 }
 0x360   :  { %v1587_v4 = vpop.xlane.xlu0 %1586 }
 0x361   :  { %2141 = vrcp.f32 %v1587_v4 }
 0x36b   :  { %v2142_v5 = vpop.eup %2141 }
 0x36c   :  { %v1589_v6 = vmul.f32 %v2142_v5, %v2140_v2 }
 0x36e   :  { %1590 = vst.msk [vmem:[#allocation4] sm:$0x3] %vm1577_vm1, %v1589_v6 }
 0x36f   :  { %2176 = shalt.err (!%p2173_p12)
}
 0x370   :  { %s2177_s5 = scalar_lea.hbm %s2726_s6, 32 }
 0x371   :  { %p2178_p13 = scmp.ne.s32.totalorder %s2726_s6, %s2177_s5  ;;  %p2181_p0 = scmp.lt.u32.totalorder %s2177_s5, %s2726_s6 }
 0x373   :  { %p2183_p1 = pnand %p2181_p0, %p2178_p13 }
 0x375   :  { %2186 = shalt.err (!%p2183_p1)
}
 0x376   :  { %1610 = dma.vmem_to_hbm [thread:$0]  %s1608_s0, 32, %s2726_s6, [#allocation5]  }
 0x377   :  { %2187 = dma.done.wait [#allocation3], 32  }
 0x378   :  { %2188 = vsyncadd [#allocation3], 4294967264 }
 0x379   :  { %2189 = dma.done.wait [#allocation5], 32  }
 0x37a   :  { %2190 = vsyncadd [#allocation5], 4294967264 }
 0x37b   :  { %1617 = vsyncpa [#allocation3], 1 }
 0x37c   :  { %1618 = vsyncpa [#allocation5], 1 }

</bundles_post_ra>
